<compile_context>
chip_gen: v6e
topology: v6e:2x2x1
jax: 0.10.0
libtpu: 0.0.40
codegen_flags: <defaults>
</compile_context>

<pallas_src>
import jax
import jax.numpy as jnp
import numpy as np
from jax import lax
from jax.experimental import pallas as pl
from jax.experimental.pallas import tpu as pltpu

# ----------------------------- config ---------------------------------------
BATCH = 2        # configs.batch_size
SEQ_LEN = 16     # configs.seq_len  (L)
D_MODEL = 8      # configs.d_model  (N, RevIN num_features, FFT length)
EMBED = 32       # configs.embed_size (E)
HIDDEN = 32      # configs.hidden_size (H)
N_HEADS = 2      # configs.n_heads
FREQ = D_MODEL // 2 + 1       # 5 rfft bins
FPAD = 8                      # padded lanes per real/imag half (>= FREQ)
FW = 2 * FPAD                 # 16: stacked [Re | Im] width
BE = BATCH * EMBED            # 64 rows (b, e)
BH = BATCH * HIDDEN           # 64 rows (b, h)
BL = BATCH * SEQ_LEN          # 32 rows (b, l)

EPS = 1e-5                    # RevIN / LayerNorm eps
LEAKY_SLOPE = 0.01            # nn.LeakyReLU default
SPARSITY = 0.01               # softshrink lambda
SCALE = 0.02                  # parameter init scale (as in the module)

# bf16 matrix-pack row offsets (lane width 64)
MP_EMB, MP_FC1, MP_WCOMB = 0, BE, BE + BH
MP_ROWS, MP_LANES = BE + BH + BL, BH                      # (160, 64)

# f32 pack row offsets (lane width 16)
FP_COLS = 0
FP_RFT = BE                   # 64: stacked [Re | Im] rfft matrix (N, FW)
FP_IFT = FP_RFT + D_MODEL     # 72: stacked [Re ; Im] irfft matrix (FW, N)
FP_REV = FP_IFT + FW          # 88: RevIN affine rows
FP_ROWS, FP_LANES = FP_REV + 8, FW                        # (96, 16)

# column indices inside the COLS section of the f32 pack
(C_EMB_B, C_LN_W, C_LN_B, C_W0, C_W1, C_RB1, C_IB1,
 C_W10, C_W11, C_RB2, C_IB2, C_LN1_W, C_LN1_B, C_FC1_B, C_BCOMB) = range(15)


def _softshrink(v, lam):
    return jnp.where(v > lam, v - lam, jnp.where(v < -lam, v + lam, 0.0))


# ----------------------------- kernel ----------------------------------------
def mlp_encoder_kernel(x_ref, mpack_ref, fpack_ref, o_ref):
    """Whole forward pass in one gridless invocation.

    x_ref     : (B*L, N)   f32   rows are (b, l), lanes are d_model features n
    mpack_ref : (160, 64)  bf16  block-diag [embedding; fc1; out_w@fc2_w]
    fpack_ref : (96, 16)   f32   param columns + DFT matrices + RevIN rows
    o_ref     : (B*L, N)   f32   rows are (b, l)  (bitcastable to (B, L, N))
    """
    f32, bf16 = jnp.float32, jnp.bfloat16
    B, L, N, E, H = BATCH, SEQ_LEN, D_MODEL, EMBED, HIDDEN

    # ---- hoisted parameter loads: one read of each pack section, then slices ----
    cols = fpack_ref[FP_COLS:FP_COLS + BE, :]            # (64, 16) f32
    rftm = fpack_ref[FP_RFT:FP_IFT, :]                   # (8, 16)  stacked [Re | Im] rfft
    iftm = fpack_ref[FP_IFT:FP_REV, 0:N]                 # (16, 8)  stacked [Re ; Im] irfft
    rev_w = fpack_ref[FP_REV + 0:FP_REV + 1, 0:N]        # (1, 8)
    rev_b = fpack_ref[FP_REV + 1:FP_REV + 2, 0:N]
    inv_rw = fpack_ref[FP_REV + 2:FP_REV + 3, 0:N]       # 1 / (rev_w + eps^2), precomputed

    def col(c, rows=BE):
        return cols[0:rows, c:c + 1]                     # (rows, 1) per-row parameter column

    emb_b_c = col(C_EMB_B)
    ln_w_c, ln_b_c = col(C_LN_W), col(C_LN_B)
    w0_c, w1_c = col(C_W0), col(C_W1)
    rb1_c, ib1_c = col(C_RB1), col(C_IB1)
    ln1_w_c, ln1_b_c = col(C_LN1_W), col(C_LN1_B)
    fc1_b_c = col(C_FC1_B)
    bcomb_c = col(C_BCOMB, rows=BL)                      # (32, 1)
    # used twice each (layers 2 and 3) -> materialize the broadcast once
    w10_b = jnp.broadcast_to(col(C_W10), (BE, FPAD))
    w11_b = jnp.broadcast_to(col(C_W11), (BE, FPAD))
    rb2_b = jnp.broadcast_to(col(C_RB2), (BE, FPAD))
    ib2_b = jnp.broadcast_to(col(C_IB2), (BE, FPAD))

    emb_bd = mpack_ref[MP_EMB:MP_EMB + BE, 0:BL]         # (64, 32) bf16
    fc1_bd = mpack_ref[MP_FC1:MP_FC1 + BH, :]            # (64, 64) bf16
    wcmb_bd = mpack_ref[MP_WCOMB:MP_WCOMB + BL, :]       # (32, 64) bf16

    # ---- RevIN 'norm': stats over L per (batch, feature); no divides ----
    x = x_ref[...]                                       # (32, 8)
    stats = []
    xn_parts = []
    for b in range(B):                                   # static unroll, B == 2
        xb = x[b * L:(b + 1) * L, :]                     # (16, 8)
        mu = jnp.mean(xb, axis=0, keepdims=True)         # (1, 8)
        d = xb - mu
        var = jnp.mean(d * d, axis=0, keepdims=True)     # unbiased=False
        inv_std = lax.rsqrt(var + EPS)
        stats.append((mu, (var + EPS) * inv_std))        # (mean, stdev) kept for denorm
        xn_parts.append(d * inv_std)
    xn = jnp.concatenate(xn_parts, axis=0) * rev_w + rev_b        # (32, 8)

    # ---- embedding Linear(L -> E): the torch permute(0,2,1) is folded into a
    #      block-diagonal weight, so rows become (b, e) and lanes stay n ----
    g = jnp.dot(emb_bd, xn.astype(bf16), preferred_element_type=f32) + emb_b_c   # (64, 8)

    def ln_over_e(v, w_c, b_c):
        # LayerNorm over the embed dim == over E-row blocks per batch
        parts = []
        for b in range(B):
            vb = v[b * E:(b + 1) * E, :]
            mu = jnp.mean(vb, axis=0, keepdims=True)
            d = vb - mu
            var = jnp.mean(d * d, axis=0, keepdims=True)
            parts.append(d * lax.rsqrt(var + EPS))
        return jnp.concatenate(parts, axis=0) * w_c + b_c

    hn = ln_over_e(g, ln_w_c, ln_b_c)                    # (64, 8) f32

    # ---- rfft over d_model (torch dim=1, the lane axis here), norm='ortho':
    #      one f32 matmul against the stacked [Re | Im] DFT matrix ----
    xf = jnp.dot(hn, rftm, preferred_element_type=f32)   # (64, 16)
    xr, xi = xf[:, 0:FPAD], xf[:, FPAD:FW]               # (64, 8) each; lanes >= FREQ are 0

    # ---- frequency-domain complex MLP (per-embed scaling == per-row here) ----
    o1r = jnp.maximum(xr * w0_c - xi * w1_c + rb1_c, 0.0)
    o1i = jnp.maximum(xi * w0_c + xr * w1_c + ib1_c, 0.0)
    o2r = o1r * w10_b - o1i * w11_b + rb2_b
    o2i = o1i * w10_b + o1r * w11_b + ib2_b
    o3r = o2r * w10_b - o2i * w11_b + rb2_b              # same weights twice, as in the module
    o3i = o2i * w10_b + o2r * w11_b + ib2_b
    wr = _softshrink(o3r, SPARSITY)
    wi = _softshrink(o3i, SPARSITY)

    # ---- x = x * weight + weight  (complex, elementwise) ----
    yr = xr * wr - xi * wi + wr
    yi = xr * wi + xi * wr + wi
    y = jnp.concatenate([yr, yi], axis=1)                # (64, 16), lane-local concat
    # garbage in the padded freq lanes is killed by the zero rows of `iftm`

    # ---- irfft(n=N, norm='ortho'): one f32 matmul ----
    ht = jnp.dot(y, iftm, preferred_element_type=f32)    # (64, 8)
    lt = ln_over_e(ht, ln1_w_c, ln1_b_c)
    # dropout: eval-mode identity
    # TODO(synk): train-mode nn.Dropout (RNG masking) not implemented.

    # ---- fc1 + LeakyReLU (block-diag weight keeps the (b, h)-row layout) ----
    h1 = jnp.dot(fc1_bd, lt.astype(bf16), preferred_element_type=f32) + fc1_b_c  # (64, 8)
    h1 = jnp.where(h1 >= 0.0, h1, LEAKY_SLOPE * h1)

    # ---- fused fc2 + output Linear(E -> L): rows become (b, l) == output layout ----
    out = jnp.dot(wcmb_bd, h1.astype(bf16), preferred_element_type=f32) + bcomb_c  # (32, 8)

    # ---- RevIN 'denorm' (reciprocal of affine weight precomputed) ----
    out = (out - rev_b) * inv_rw
    for b in range(B):
        mu, sd = stats[b]
        o_ref[b * L:(b + 1) * L, :] = out[b * L:(b + 1) * L, :] * sd + mu


# ----------------------------- parameters & packing ---------------------------
def make_params(key):
    keys = jax.random.split(key, 14)
    f32 = jnp.float32
    p = {}
    p["emb_w"] = 0.1 * jax.random.normal(keys[0], (EMBED, SEQ_LEN), f32)
    p["emb_b"] = 0.1 * jax.random.normal(keys[1], (EMBED,), f32)
    p["ln_w"] = jnp.ones((EMBED,), f32)
    p["ln_b"] = jnp.zeros((EMBED,), f32)
    p["ln1_w"] = jnp.ones((EMBED,), f32)
    p["ln1_b"] = jnp.zeros((EMBED,), f32)
    p["w"] = SCALE * jax.random.normal(keys[2], (2, EMBED), f32)
    p["w1"] = SCALE * jax.random.normal(keys[3], (2, EMBED), f32)
    p["rb1"] = SCALE * jax.random.normal(keys[4], (EMBED,), f32)
    p["ib1"] = SCALE * jax.random.normal(keys[5], (EMBED,), f32)
    p["rb2"] = SCALE * jax.random.normal(keys[6], (EMBED,), f32)
    p["ib2"] = SCALE * jax.random.normal(keys[7], (EMBED,), f32)
    p["fc1_w"] = 0.1 * jax.random.normal(keys[8], (HIDDEN, EMBED), f32)
    p["fc1_b"] = 0.1 * jax.random.normal(keys[9], (HIDDEN,), f32)
    p["fc2_w"] = 0.1 * jax.random.normal(keys[10], (EMBED, HIDDEN), f32)
    p["fc2_b"] = 0.1 * jax.random.normal(keys[11], (EMBED,), f32)
    p["out_w"] = 0.1 * jax.random.normal(keys[12], (SEQ_LEN, EMBED), f32)
    p["out_b"] = 0.1 * jax.random.normal(keys[13], (SEQ_LEN,), f32)
    p["rev_w"] = jnp.ones((D_MODEL,), f32)
    p["rev_b"] = jnp.zeros((D_MODEL,), f32)
    return p


def pack_params(p):
    """One-time static packing of every parameter into 2 kernel inputs."""
    f32 = np.float32

    def nb(a):
        return np.asarray(a, f32)

    def block_diag(m):
        m = nb(m)
        r, c = m.shape
        out = np.zeros((BATCH * r, BATCH * c), f32)
        for b in range(BATCH):
            out[b * r:(b + 1) * r, b * c:(b + 1) * c] = m
        return out

    # --- bf16 matrix pack: block-diagonal (over batch) Linear weights ---
    wcomb = nb(p["out_w"]) @ nb(p["fc2_w"])                      # (L, H): fc2 folded into output
    bcomb = nb(p["out_w"]) @ nb(p["fc2_b"]) + nb(p["out_b"])     # (L,)
    mpack = np.zeros((MP_ROWS, MP_LANES), f32)
    mpack[MP_EMB:MP_EMB + BE, 0:BL] = block_diag(p["emb_w"])     # (64, 32)
    mpack[MP_FC1:MP_FC1 + BH, :] = block_diag(p["fc1_w"])        # (64, 64)
    mpack[MP_WCOMB:MP_WCOMB + BL, :] = block_diag(wcomb)         # (32, 64)

    # --- f32 pack: per-row parameter columns + DFT matrices + RevIN rows ---
    fpack = np.zeros((FP_ROWS, FP_LANES), f32)

    def tile_col(v):
        return np.tile(nb(v).reshape(-1), BATCH)

    cols = np.zeros((BE, FP_LANES), f32)
    cols[:, C_EMB_B] = tile_col(p["emb_b"])
    cols[:, C_LN_W] = tile_col(p["ln_w"])
    cols[:, C_LN_B] = tile_col(p["ln_b"])
    cols[:, C_W0] = tile_col(p["w"][0])
    cols[:, C_W1] = tile_col(p["w"][1])
    cols[:, C_RB1] = tile_col(p["rb1"])
    cols[:, C_IB1] = tile_col(p["ib1"])
    cols[:, C_W10] = tile_col(p["w1"][0])
    cols[:, C_W11] = tile_col(p["w1"][1])
    cols[:, C_RB2] = tile_col(p["rb2"])
    cols[:, C_IB2] = tile_col(p["ib2"])
    cols[:, C_LN1_W] = tile_col(p["ln1_w"])
    cols[:, C_LN1_B] = tile_col(p["ln1_b"])
    cols[:, C_FC1_B] = tile_col(p["fc1_b"])
    cols[0:BL, C_BCOMB] = tile_col(bcomb)
    fpack[FP_COLS:FP_COLS + BE, :] = cols

    # rfft / irfft along a length-N axis (norm='ortho') as explicit real matrices,
    # built by probing numpy's transforms with real / imaginary basis vectors.
    rmat = np.fft.rfft(np.eye(D_MODEL), axis=0, norm="ortho")              # (F, N) complex
    fpack[FP_RFT:FP_IFT, 0:FREQ] = np.real(rmat).T
    fpack[FP_RFT:FP_IFT, FPAD:FPAD + FREQ] = np.imag(rmat).T
    eye_f = np.eye(FREQ, dtype=np.complex128)
    ir = np.fft.irfft(eye_f, n=D_MODEL, axis=0, norm="ortho")              # (N, F)
    ii = np.fft.irfft(1j * eye_f, n=D_MODEL, axis=0, norm="ortho")         # (N, F)
    fpack[FP_IFT:FP_IFT + FREQ, 0:D_MODEL] = ir.T
    fpack[FP_IFT + FPAD:FP_IFT + FPAD + FREQ, 0:D_MODEL] = ii.T

    # RevIN affine params as (1, N) rows; reciprocal precomputed (no VPU divide)
    fpack[FP_REV + 0, 0:D_MODEL] = nb(p["rev_w"])
    fpack[FP_REV + 1, 0:D_MODEL] = nb(p["rev_b"])
    fpack[FP_REV + 2, 0:D_MODEL] = 1.0 / (nb(p["rev_w"]) + EPS * EPS)

    return jnp.asarray(mpack, jnp.bfloat16), jnp.asarray(fpack, jnp.float32)


# ----------------------------- wrapper ----------------------------------------
@jax.jit
def mlp_encoder_forward(x, mpack, fpack):
    """x: (B, seq_len, d_model) f32 -> (B, n_heads, d_model // n_heads, seq_len)."""
    B, L, N = x.shape
    x2 = x.reshape(B * L, N)        # contiguous reshape: pure bitcast, no relayout
    out2 = pl.pallas_call(
        mlp_encoder_kernel,
        out_shape=jax.ShapeDtypeStruct((B * L, N), jnp.float32),
        in_specs=[
            pl.BlockSpec(memory_space=pltpu.MemorySpace.VMEM),
            pl.BlockSpec(memory_space=pltpu.MemorySpace.VMEM),
            pl.BlockSpec(memory_space=pltpu.MemorySpace.VMEM),
        ],
        out_specs=pl.BlockSpec(memory_space=pltpu.MemorySpace.VMEM),
        cost_estimate=pl.CostEstimate(
            flops=163_840, bytes_accessed=28_672, transcendentals=64),
        # no grid: single invocation, whole (tiny) arrays staged to VMEM
    )(x2, mpack, fpack)
    # kernel rows are already (b, l)-major, so the module's final reshape is a bitcast
    return out2.reshape(B, N_HEADS, N // N_HEADS, L)


if __name__ == "__main__":
    key = jax.random.PRNGKey(0)
    k_x, k_p = jax.random.split(key)
    x = jax.random.normal(k_x, (BATCH, SEQ_LEN, D_MODEL), jnp.float32)
    params = make_params(k_p)
    mpack, fpack = pack_params(params)   # one-time static packing

    y = mlp_encoder_forward(x, mpack, fpack)
    jax.block_until_ready(y)
    assert y.shape == (BATCH, N_HEADS, D_MODEL // N_HEADS, SEQ_LEN)
    assert bool(jnp.all(jnp.isfinite(y)))
    print("KERNEL_OK")
</pallas_src>

<mosaic_0001>
module attributes {stable_mosaic.version = 11 : i64} {
  func.func @mlp_encoder_kernel(%arg0: memref<32x8xf32, #tpu.memory_space<vmem>>, %arg1: memref<160x64xbf16, #tpu.memory_space<vmem>>, %arg2: memref<96x16xf32, #tpu.memory_space<vmem>>, %arg3: memref<32x8xf32, #tpu.memory_space<vmem>>) attributes {dimension_semantics = [], scalar_prefetch = 0 : i64, scratch_operands = 0 : i64, tpu.core_type = #tpu.core_type<tc>} {
    %c0 = arith.constant 0 : index
    %c0_0 = arith.constant 0 : index
    %0 = vector.load %arg2[%c0, %c0_0] : memref<96x16xf32, #tpu.memory_space<vmem>>, vector<64x16xf32>
    %c64 = arith.constant 64 : index
    %c0_1 = arith.constant 0 : index
    %1 = vector.load %arg2[%c64, %c0_1] : memref<96x16xf32, #tpu.memory_space<vmem>>, vector<8x16xf32>
    %c72 = arith.constant 72 : index
    %c0_2 = arith.constant 0 : index
    %2 = vector.load %arg2[%c72, %c0_2] : memref<96x16xf32, #tpu.memory_space<vmem>>, vector<16x8xf32>
    %c88 = arith.constant 88 : index
    %c0_3 = arith.constant 0 : index
    %3 = vector.load %arg2[%c88, %c0_3] : memref<96x16xf32, #tpu.memory_space<vmem>>, vector<1x8xf32>
    %c89 = arith.constant 89 : index
    %c0_4 = arith.constant 0 : index
    %4 = vector.load %arg2[%c89, %c0_4] : memref<96x16xf32, #tpu.memory_space<vmem>>, vector<1x8xf32>
    %c90 = arith.constant 90 : index
    %c0_5 = arith.constant 0 : index
    %5 = vector.load %arg2[%c90, %c0_5] : memref<96x16xf32, #tpu.memory_space<vmem>>, vector<1x8xf32>
    %6 = vector.extract_strided_slice %0 {offsets = [0, 0], sizes = [64, 1], strides = [1, 1]} : vector<64x16xf32> to vector<64x1xf32>
    %7 = vector.extract_strided_slice %0 {offsets = [0, 1], sizes = [64, 1], strides = [1, 1]} : vector<64x16xf32> to vector<64x1xf32>
    %8 = vector.extract_strided_slice %0 {offsets = [0, 2], sizes = [64, 1], strides = [1, 1]} : vector<64x16xf32> to vector<64x1xf32>
    %9 = vector.extract_strided_slice %0 {offsets = [0, 3], sizes = [64, 1], strides = [1, 1]} : vector<64x16xf32> to vector<64x1xf32>
    %10 = vector.extract_strided_slice %0 {offsets = [0, 4], sizes = [64, 1], strides = [1, 1]} : vector<64x16xf32> to vector<64x1xf32>
    %11 = vector.extract_strided_slice %0 {offsets = [0, 5], sizes = [64, 1], strides = [1, 1]} : vector<64x16xf32> to vector<64x1xf32>
    %12 = vector.extract_strided_slice %0 {offsets = [0, 6], sizes = [64, 1], strides = [1, 1]} : vector<64x16xf32> to vector<64x1xf32>
    %13 = vector.extract_strided_slice %0 {offsets = [0, 11], sizes = [64, 1], strides = [1, 1]} : vector<64x16xf32> to vector<64x1xf32>
    %14 = vector.extract_strided_slice %0 {offsets = [0, 12], sizes = [64, 1], strides = [1, 1]} : vector<64x16xf32> to vector<64x1xf32>
    %15 = vector.extract_strided_slice %0 {offsets = [0, 13], sizes = [64, 1], strides = [1, 1]} : vector<64x16xf32> to vector<64x1xf32>
    %16 = vector.extract_strided_slice %0 {offsets = [0, 14], sizes = [32, 1], strides = [1, 1]} : vector<64x16xf32> to vector<32x1xf32>
    %17 = vector.extract_strided_slice %0 {offsets = [0, 7], sizes = [64, 1], strides = [1, 1]} : vector<64x16xf32> to vector<64x1xf32>
    %18 = vector.shape_cast %17 : vector<64x1xf32> to vector<64x1xf32>
    %19 = vector.broadcast %18 : vector<64x1xf32> to vector<64x8xf32>
    %20 = vector.extract_strided_slice %0 {offsets = [0, 8], sizes = [64, 1], strides = [1, 1]} : vector<64x16xf32> to vector<64x1xf32>
    %21 = vector.shape_cast %20 : vector<64x1xf32> to vector<64x1xf32>
    %22 = vector.broadcast %21 : vector<64x1xf32> to vector<64x8xf32>
    %23 = vector.extract_strided_slice %0 {offsets = [0, 9], sizes = [64, 1], strides = [1, 1]} : vector<64x16xf32> to vector<64x1xf32>
    %24 = vector.shape_cast %23 : vector<64x1xf32> to vector<64x1xf32>
    %25 = vector.broadcast %24 : vector<64x1xf32> to vector<64x8xf32>
    %26 = vector.extract_strided_slice %0 {offsets = [0, 10], sizes = [64, 1], strides = [1, 1]} : vector<64x16xf32> to vector<64x1xf32>
    %27 = vector.shape_cast %26 : vector<64x1xf32> to vector<64x1xf32>
    %28 = vector.broadcast %27 : vector<64x1xf32> to vector<64x8xf32>
    %c0_6 = arith.constant 0 : index
    %c0_7 = arith.constant 0 : index
    %29 = vector.load %arg1[%c0_6, %c0_7] : memref<160x64xbf16, #tpu.memory_space<vmem>>, vector<64x32xbf16>
    %c64_8 = arith.constant 64 : index
    %c0_9 = arith.constant 0 : index
    %30 = vector.load %arg1[%c64_8, %c0_9] : memref<160x64xbf16, #tpu.memory_space<vmem>>, vector<64x64xbf16>
    %c128 = arith.constant 128 : index
    %c0_10 = arith.constant 0 : index
    %31 = vector.load %arg1[%c128, %c0_10] : memref<160x64xbf16, #tpu.memory_space<vmem>>, vector<32x64xbf16>
    %c0_11 = arith.constant 0 : index
    %c0_12 = arith.constant 0 : index
    %32 = vector.load %arg0[%c0_11, %c0_12] : memref<32x8xf32, #tpu.memory_space<vmem>>, vector<32x8xf32>
    %33 = vector.extract_strided_slice %32 {offsets = [0, 0], sizes = [16, 8], strides = [1, 1]} : vector<32x8xf32> to vector<16x8xf32>
    %cst = arith.constant dense<0.000000e+00> : vector<8xf32>
    %34 = vector.multi_reduction <add>, %33, %cst [0] : vector<16x8xf32> to vector<8xf32>
    %35 = vector.shape_cast %34 : vector<8xf32> to vector<1x8xf32>
    %cst_13 = arith.constant 1.600000e+01 : f32
    %36 = vector.broadcast %cst_13 : f32 to vector<1x8xf32>
    %37 = arith.divf %35, %36 : vector<1x8xf32>
    %38 = vector.broadcast %37 : vector<1x8xf32> to vector<16x8xf32>
    %39 = arith.subf %33, %38 : vector<16x8xf32>
    %40 = arith.mulf %39, %39 : vector<16x8xf32>
    %cst_14 = arith.constant dense<0.000000e+00> : vector<8xf32>
    %41 = vector.multi_reduction <add>, %40, %cst_14 [0] : vector<16x8xf32> to vector<8xf32>
    %42 = vector.shape_cast %41 : vector<8xf32> to vector<1x8xf32>
    %cst_15 = arith.constant 1.600000e+01 : f32
    %43 = vector.broadcast %cst_15 : f32 to vector<1x8xf32>
    %44 = arith.divf %42, %43 : vector<1x8xf32>
    %cst_16 = arith.constant 9.99999974E-6 : f32
    %45 = vector.broadcast %cst_16 : f32 to vector<1x8xf32>
    %46 = arith.addf %44, %45 : vector<1x8xf32>
    %47 = math.rsqrt %46 : vector<1x8xf32>
    %cst_17 = arith.constant 9.99999974E-6 : f32
    %48 = vector.broadcast %cst_17 : f32 to vector<1x8xf32>
    %49 = arith.addf %44, %48 : vector<1x8xf32>
    %50 = arith.mulf %49, %47 : vector<1x8xf32>
    %51 = vector.broadcast %47 : vector<1x8xf32> to vector<16x8xf32>
    %52 = arith.mulf %39, %51 : vector<16x8xf32>
    %53 = vector.extract_strided_slice %32 {offsets = [16, 0], sizes = [16, 8], strides = [1, 1]} : vector<32x8xf32> to vector<16x8xf32>
    %cst_18 = arith.constant dense<0.000000e+00> : vector<8xf32>
    %54 = vector.multi_reduction <add>, %53, %cst_18 [0] : vector<16x8xf32> to vector<8xf32>
    %55 = vector.shape_cast %54 : vector<8xf32> to vector<1x8xf32>
    %cst_19 = arith.constant 1.600000e+01 : f32
    %56 = vector.broadcast %cst_19 : f32 to vector<1x8xf32>
    %57 = arith.divf %55, %56 : vector<1x8xf32>
    %58 = vector.broadcast %57 : vector<1x8xf32> to vector<16x8xf32>
    %59 = arith.subf %53, %58 : vector<16x8xf32>
    %60 = arith.mulf %59, %59 : vector<16x8xf32>
    %cst_20 = arith.constant dense<0.000000e+00> : vector<8xf32>
    %61 = vector.multi_reduction <add>, %60, %cst_20 [0] : vector<16x8xf32> to vector<8xf32>
    %62 = vector.shape_cast %61 : vector<8xf32> to vector<1x8xf32>
    %cst_21 = arith.constant 1.600000e+01 : f32
    %63 = vector.broadcast %cst_21 : f32 to vector<1x8xf32>
    %64 = arith.divf %62, %63 : vector<1x8xf32>
    %cst_22 = arith.constant 9.99999974E-6 : f32
    %65 = vector.broadcast %cst_22 : f32 to vector<1x8xf32>
    %66 = arith.addf %64, %65 : vector<1x8xf32>
    %67 = math.rsqrt %66 : vector<1x8xf32>
    %cst_23 = arith.constant 9.99999974E-6 : f32
    %68 = vector.broadcast %cst_23 : f32 to vector<1x8xf32>
    %69 = arith.addf %64, %68 : vector<1x8xf32>
    %70 = arith.mulf %69, %67 : vector<1x8xf32>
    %71 = vector.broadcast %67 : vector<1x8xf32> to vector<16x8xf32>
    %72 = arith.mulf %59, %71 : vector<16x8xf32>
    %73 = tpu.concatenate %52, %72 in 0 : vector<16x8xf32>, vector<16x8xf32> -> vector<32x8xf32>
    %74 = vector.broadcast %3 : vector<1x8xf32> to vector<32x8xf32>
    %75 = arith.mulf %73, %74 : vector<32x8xf32>
    %76 = vector.broadcast %4 : vector<1x8xf32> to vector<32x8xf32>
    %77 = arith.addf %75, %76 : vector<32x8xf32>
    %78 = arith.truncf %77 : vector<32x8xf32> to vector<32x8xbf16>
    %cst_24 = arith.constant dense<0.000000e+00> : vector<64x8xf32>
    %79 = tpu.matmul %29, %78, %cst_24 {dimension_numbers = #tpu.dot_dimension_numbers<[1], [0], [0], [1], [0, 0, 1, 1], [], []>} : vector<64x32xbf16>, vector<32x8xbf16>, vector<64x8xf32> -> vector<64x8xf32>
    %80 = vector.broadcast %6 : vector<64x1xf32> to vector<64x8xf32>
    %81 = arith.addf %79, %80 : vector<64x8xf32>
    %82 = vector.extract_strided_slice %81 {offsets = [0, 0], sizes = [32, 8], strides = [1, 1]} : vector<64x8xf32> to vector<32x8xf32>
    %cst_25 = arith.constant dense<0.000000e+00> : vector<8xf32>
    %83 = vector.multi_reduction <add>, %82, %cst_25 [0] : vector<32x8xf32> to vector<8xf32>
    %84 = vector.shape_cast %83 : vector<8xf32> to vector<1x8xf32>
    %cst_26 = arith.constant 3.200000e+01 : f32
    %85 = vector.broadcast %cst_26 : f32 to vector<1x8xf32>
    %86 = arith.divf %84, %85 : vector<1x8xf32>
    %87 = vector.broadcast %86 : vector<1x8xf32> to vector<32x8xf32>
    %88 = arith.subf %82, %87 : vector<32x8xf32>
    %89 = arith.mulf %88, %88 : vector<32x8xf32>
    %cst_27 = arith.constant dense<0.000000e+00> : vector<8xf32>
    %90 = vector.multi_reduction <add>, %89, %cst_27 [0] : vector<32x8xf32> to vector<8xf32>
    %91 = vector.shape_cast %90 : vector<8xf32> to vector<1x8xf32>
    %cst_28 = arith.constant 3.200000e+01 : f32
    %92 = vector.broadcast %cst_28 : f32 to vector<1x8xf32>
    %93 = arith.divf %91, %92 : vector<1x8xf32>
    %cst_29 = arith.constant 9.99999974E-6 : f32
    %94 = vector.broadcast %cst_29 : f32 to vector<1x8xf32>
    %95 = arith.addf %93, %94 : vector<1x8xf32>
    %96 = math.rsqrt %95 : vector<1x8xf32>
    %97 = vector.broadcast %96 : vector<1x8xf32> to vector<32x8xf32>
    %98 = arith.mulf %88, %97 : vector<32x8xf32>
    %99 = vector.extract_strided_slice %81 {offsets = [32, 0], sizes = [32, 8], strides = [1, 1]} : vector<64x8xf32> to vector<32x8xf32>
    %cst_30 = arith.constant dense<0.000000e+00> : vector<8xf32>
    %100 = vector.multi_reduction <add>, %99, %cst_30 [0] : vector<32x8xf32> to vector<8xf32>
    %101 = vector.shape_cast %100 : vector<8xf32> to vector<1x8xf32>
    %cst_31 = arith.constant 3.200000e+01 : f32
    %102 = vector.broadcast %cst_31 : f32 to vector<1x8xf32>
    %103 = arith.divf %101, %102 : vector<1x8xf32>
    %104 = vector.broadcast %103 : vector<1x8xf32> to vector<32x8xf32>
    %105 = arith.subf %99, %104 : vector<32x8xf32>
    %106 = arith.mulf %105, %105 : vector<32x8xf32>
    %cst_32 = arith.constant dense<0.000000e+00> : vector<8xf32>
    %107 = vector.multi_reduction <add>, %106, %cst_32 [0] : vector<32x8xf32> to vector<8xf32>
    %108 = vector.shape_cast %107 : vector<8xf32> to vector<1x8xf32>
    %cst_33 = arith.constant 3.200000e+01 : f32
    %109 = vector.broadcast %cst_33 : f32 to vector<1x8xf32>
    %110 = arith.divf %108, %109 : vector<1x8xf32>
    %cst_34 = arith.constant 9.99999974E-6 : f32
    %111 = vector.broadcast %cst_34 : f32 to vector<1x8xf32>
    %112 = arith.addf %110, %111 : vector<1x8xf32>
    %113 = math.rsqrt %112 : vector<1x8xf32>
    %114 = vector.broadcast %113 : vector<1x8xf32> to vector<32x8xf32>
    %115 = arith.mulf %105, %114 : vector<32x8xf32>
    %116 = tpu.concatenate %98, %115 in 0 : vector<32x8xf32>, vector<32x8xf32> -> vector<64x8xf32>
    %117 = vector.broadcast %7 : vector<64x1xf32> to vector<64x8xf32>
    %118 = arith.mulf %116, %117 : vector<64x8xf32>
    %119 = vector.broadcast %8 : vector<64x1xf32> to vector<64x8xf32>
    %120 = arith.addf %118, %119 : vector<64x8xf32>
    %cst_35 = arith.constant dense<0.000000e+00> : vector<64x16xf32>
    %121 = tpu.matmul %120, %1, %cst_35 {dimension_numbers = #tpu.dot_dimension_numbers<[1], [0], [0], [1], [0, 0, 1, 1], [], []>} : vector<64x8xf32>, vector<8x16xf32>, vector<64x16xf32> -> vector<64x16xf32>
    %122 = vector.extract_strided_slice %121 {offsets = [0, 0], sizes = [64, 8], strides = [1, 1]} : vector<64x16xf32> to vector<64x8xf32>
    %123 = vector.extract_strided_slice %121 {offsets = [0, 8], sizes = [64, 8], strides = [1, 1]} : vector<64x16xf32> to vector<64x8xf32>
    %124 = vector.broadcast %9 : vector<64x1xf32> to vector<64x8xf32>
    %125 = arith.mulf %122, %124 : vector<64x8xf32>
    %126 = vector.broadcast %10 : vector<64x1xf32> to vector<64x8xf32>
    %127 = arith.mulf %123, %126 : vector<64x8xf32>
    %128 = arith.subf %125, %127 : vector<64x8xf32>
    %129 = vector.broadcast %11 : vector<64x1xf32> to vector<64x8xf32>
    %130 = arith.addf %128, %129 : vector<64x8xf32>
    %cst_36 = arith.constant 0.000000e+00 : f32
    %131 = vector.broadcast %cst_36 : f32 to vector<64x8xf32>
    %132 = arith.maximumf %130, %131 : vector<64x8xf32>
    %133 = vector.broadcast %9 : vector<64x1xf32> to vector<64x8xf32>
    %134 = arith.mulf %123, %133 : vector<64x8xf32>
    %135 = vector.broadcast %10 : vector<64x1xf32> to vector<64x8xf32>
    %136 = arith.mulf %122, %135 : vector<64x8xf32>
    %137 = arith.addf %134, %136 : vector<64x8xf32>
    %138 = vector.broadcast %12 : vector<64x1xf32> to vector<64x8xf32>
    %139 = arith.addf %137, %138 : vector<64x8xf32>
    %cst_37 = arith.constant 0.000000e+00 : f32
    %140 = vector.broadcast %cst_37 : f32 to vector<64x8xf32>
    %141 = arith.maximumf %139, %140 : vector<64x8xf32>
    %142 = arith.mulf %132, %19 : vector<64x8xf32>
    %143 = arith.mulf %141, %22 : vector<64x8xf32>
    %144 = arith.subf %142, %143 : vector<64x8xf32>
    %145 = arith.addf %144, %25 : vector<64x8xf32>
    %146 = arith.mulf %141, %19 : vector<64x8xf32>
    %147 = arith.mulf %132, %22 : vector<64x8xf32>
    %148 = arith.addf %146, %147 : vector<64x8xf32>
    %149 = arith.addf %148, %28 : vector<64x8xf32>
    %150 = arith.mulf %145, %19 : vector<64x8xf32>
    %151 = arith.mulf %149, %22 : vector<64x8xf32>
    %152 = arith.subf %150, %151 : vector<64x8xf32>
    %153 = arith.addf %152, %25 : vector<64x8xf32>
    %154 = arith.mulf %149, %19 : vector<64x8xf32>
    %155 = arith.mulf %145, %22 : vector<64x8xf32>
    %156 = arith.addf %154, %155 : vector<64x8xf32>
    %157 = arith.addf %156, %28 : vector<64x8xf32>
    %cst_38 = arith.constant 0.00999999977 : f32
    %158 = vector.broadcast %cst_38 : f32 to vector<64x8xf32>
    %159 = arith.cmpf ogt, %153, %158 : vector<64x8xf32>
    %cst_39 = arith.constant 0.00999999977 : f32
    %160 = vector.broadcast %cst_39 : f32 to vector<64x8xf32>
    %161 = arith.subf %153, %160 : vector<64x8xf32>
    %cst_40 = arith.constant -0.00999999977 : f32
    %162 = vector.broadcast %cst_40 : f32 to vector<64x8xf32>
    %163 = arith.cmpf olt, %153, %162 : vector<64x8xf32>
    %cst_41 = arith.constant 0.00999999977 : f32
    %164 = vector.broadcast %cst_41 : f32 to vector<64x8xf32>
    %165 = arith.addf %153, %164 : vector<64x8xf32>
    %cst_42 = arith.constant 0.000000e+00 : f32
    %166 = vector.broadcast %cst_42 : f32 to vector<64x8xf32>
    %167 = arith.select %163, %165, %166 : vector<64x8xi1>, vector<64x8xf32>
    %168 = arith.select %159, %161, %167 : vector<64x8xi1>, vector<64x8xf32>
    %cst_43 = arith.constant 0.00999999977 : f32
    %169 = vector.broadcast %cst_43 : f32 to vector<64x8xf32>
    %170 = arith.cmpf ogt, %157, %169 : vector<64x8xf32>
    %cst_44 = arith.constant 0.00999999977 : f32
    %171 = vector.broadcast %cst_44 : f32 to vector<64x8xf32>
    %172 = arith.subf %157, %171 : vector<64x8xf32>
    %cst_45 = arith.constant -0.00999999977 : f32
    %173 = vector.broadcast %cst_45 : f32 to vector<64x8xf32>
    %174 = arith.cmpf olt, %157, %173 : vector<64x8xf32>
    %cst_46 = arith.constant 0.00999999977 : f32
    %175 = vector.broadcast %cst_46 : f32 to vector<64x8xf32>
    %176 = arith.addf %157, %175 : vector<64x8xf32>
    %cst_47 = arith.constant 0.000000e+00 : f32
    %177 = vector.broadcast %cst_47 : f32 to vector<64x8xf32>
    %178 = arith.select %174, %176, %177 : vector<64x8xi1>, vector<64x8xf32>
    %179 = arith.select %170, %172, %178 : vector<64x8xi1>, vector<64x8xf32>
    %180 = arith.mulf %122, %168 : vector<64x8xf32>
    %181 = arith.mulf %123, %179 : vector<64x8xf32>
    %182 = arith.subf %180, %181 : vector<64x8xf32>
    %183 = arith.addf %182, %168 : vector<64x8xf32>
    %184 = arith.mulf %122, %179 : vector<64x8xf32>
    %185 = arith.mulf %123, %168 : vector<64x8xf32>
    %186 = arith.addf %184, %185 : vector<64x8xf32>
    %187 = arith.addf %186, %179 : vector<64x8xf32>
    %188 = tpu.concatenate %183, %187 in 1 : vector<64x8xf32>, vector<64x8xf32> -> vector<64x16xf32>
    %cst_48 = arith.constant dense<0.000000e+00> : vector<64x8xf32>
    %189 = tpu.matmul %188, %2, %cst_48 {dimension_numbers = #tpu.dot_dimension_numbers<[1], [0], [0], [1], [0, 0, 1, 1], [], []>} : vector<64x16xf32>, vector<16x8xf32>, vector<64x8xf32> -> vector<64x8xf32>
    %190 = vector.extract_strided_slice %189 {offsets = [0, 0], sizes = [32, 8], strides = [1, 1]} : vector<64x8xf32> to vector<32x8xf32>
    %cst_49 = arith.constant dense<0.000000e+00> : vector<8xf32>
    %191 = vector.multi_reduction <add>, %190, %cst_49 [0] : vector<32x8xf32> to vector<8xf32>
    %192 = vector.shape_cast %191 : vector<8xf32> to vector<1x8xf32>
    %cst_50 = arith.constant 3.200000e+01 : f32
    %193 = vector.broadcast %cst_50 : f32 to vector<1x8xf32>
    %194 = arith.divf %192, %193 : vector<1x8xf32>
    %195 = vector.broadcast %194 : vector<1x8xf32> to vector<32x8xf32>
    %196 = arith.subf %190, %195 : vector<32x8xf32>
    %197 = arith.mulf %196, %196 : vector<32x8xf32>
    %cst_51 = arith.constant dense<0.000000e+00> : vector<8xf32>
    %198 = vector.multi_reduction <add>, %197, %cst_51 [0] : vector<32x8xf32> to vector<8xf32>
    %199 = vector.shape_cast %198 : vector<8xf32> to vector<1x8xf32>
    %cst_52 = arith.constant 3.200000e+01 : f32
    %200 = vector.broadcast %cst_52 : f32 to vector<1x8xf32>
    %201 = arith.divf %199, %200 : vector<1x8xf32>
    %cst_53 = arith.constant 9.99999974E-6 : f32
    %202 = vector.broadcast %cst_53 : f32 to vector<1x8xf32>
    %203 = arith.addf %201, %202 : vector<1x8xf32>
    %204 = math.rsqrt %203 : vector<1x8xf32>
    %205 = vector.broadcast %204 : vector<1x8xf32> to vector<32x8xf32>
    %206 = arith.mulf %196, %205 : vector<32x8xf32>
    %207 = vector.extract_strided_slice %189 {offsets = [32, 0], sizes = [32, 8], strides = [1, 1]} : vector<64x8xf32> to vector<32x8xf32>
    %cst_54 = arith.constant dense<0.000000e+00> : vector<8xf32>
    %208 = vector.multi_reduction <add>, %207, %cst_54 [0] : vector<32x8xf32> to vector<8xf32>
    %209 = vector.shape_cast %208 : vector<8xf32> to vector<1x8xf32>
    %cst_55 = arith.constant 3.200000e+01 : f32
    %210 = vector.broadcast %cst_55 : f32 to vector<1x8xf32>
    %211 = arith.divf %209, %210 : vector<1x8xf32>
    %212 = vector.broadcast %211 : vector<1x8xf32> to vector<32x8xf32>
    %213 = arith.subf %207, %212 : vector<32x8xf32>
    %214 = arith.mulf %213, %213 : vector<32x8xf32>
    %cst_56 = arith.constant dense<0.000000e+00> : vector<8xf32>
    %215 = vector.multi_reduction <add>, %214, %cst_56 [0] : vector<32x8xf32> to vector<8xf32>
    %216 = vector.shape_cast %215 : vector<8xf32> to vector<1x8xf32>
    %cst_57 = arith.constant 3.200000e+01 : f32
    %217 = vector.broadcast %cst_57 : f32 to vector<1x8xf32>
    %218 = arith.divf %216, %217 : vector<1x8xf32>
    %cst_58 = arith.constant 9.99999974E-6 : f32
    %219 = vector.broadcast %cst_58 : f32 to vector<1x8xf32>
    %220 = arith.addf %218, %219 : vector<1x8xf32>
    %221 = math.rsqrt %220 : vector<1x8xf32>
    %222 = vector.broadcast %221 : vector<1x8xf32> to vector<32x8xf32>
    %223 = arith.mulf %213, %222 : vector<32x8xf32>
    %224 = tpu.concatenate %206, %223 in 0 : vector<32x8xf32>, vector<32x8xf32> -> vector<64x8xf32>
    %225 = vector.broadcast %13 : vector<64x1xf32> to vector<64x8xf32>
    %226 = arith.mulf %224, %225 : vector<64x8xf32>
    %227 = vector.broadcast %14 : vector<64x1xf32> to vector<64x8xf32>
    %228 = arith.addf %226, %227 : vector<64x8xf32>
    %229 = arith.truncf %228 : vector<64x8xf32> to vector<64x8xbf16>
    %cst_59 = arith.constant dense<0.000000e+00> : vector<64x8xf32>
    %230 = tpu.matmul %30, %229, %cst_59 {dimension_numbers = #tpu.dot_dimension_numbers<[1], [0], [0], [1], [0, 0, 1, 1], [], []>} : vector<64x64xbf16>, vector<64x8xbf16>, vector<64x8xf32> -> vector<64x8xf32>
    %231 = vector.broadcast %15 : vector<64x1xf32> to vector<64x8xf32>
    %232 = arith.addf %230, %231 : vector<64x8xf32>
    %cst_60 = arith.constant 0.000000e+00 : f32
    %233 = vector.broadcast %cst_60 : f32 to vector<64x8xf32>
    %234 = arith.cmpf oge, %232, %233 : vector<64x8xf32>
    %cst_61 = arith.constant 0.00999999977 : f32
    %235 = vector.broadcast %cst_61 : f32 to vector<64x8xf32>
    %236 = arith.mulf %235, %232 : vector<64x8xf32>
    %237 = arith.select %234, %232, %236 : vector<64x8xi1>, vector<64x8xf32>
    %238 = arith.truncf %237 : vector<64x8xf32> to vector<64x8xbf16>
    %cst_62 = arith.constant dense<0.000000e+00> : vector<32x8xf32>
    %239 = tpu.matmul %31, %238, %cst_62 {dimension_numbers = #tpu.dot_dimension_numbers<[1], [0], [0], [1], [0, 0, 1, 1], [], []>} : vector<32x64xbf16>, vector<64x8xbf16>, vector<32x8xf32> -> vector<32x8xf32>
    %240 = vector.broadcast %16 : vector<32x1xf32> to vector<32x8xf32>
    %241 = arith.addf %239, %240 : vector<32x8xf32>
    %242 = vector.broadcast %4 : vector<1x8xf32> to vector<32x8xf32>
    %243 = arith.subf %241, %242 : vector<32x8xf32>
    %244 = vector.broadcast %5 : vector<1x8xf32> to vector<32x8xf32>
    %245 = arith.mulf %243, %244 : vector<32x8xf32>
    %246 = vector.extract_strided_slice %245 {offsets = [0, 0], sizes = [16, 8], strides = [1, 1]} : vector<32x8xf32> to vector<16x8xf32>
    %247 = vector.broadcast %50 : vector<1x8xf32> to vector<16x8xf32>
    %248 = arith.mulf %246, %247 : vector<16x8xf32>
    %249 = vector.broadcast %37 : vector<1x8xf32> to vector<16x8xf32>
    %250 = arith.addf %248, %249 : vector<16x8xf32>
    %c0_63 = arith.constant 0 : index
    %c0_64 = arith.constant 0 : index
    %251 = vector.load %arg3[%c0_63, %c0_64] : memref<32x8xf32, #tpu.memory_space<vmem>>, vector<16x8xf32>
    tpu.vector_store %arg3[%c0_63, %c0_64], %250 {strides = array<i32>} : memref<32x8xf32, #tpu.memory_space<vmem>>, vector<16x8xf32>,
    %252 = vector.extract_strided_slice %245 {offsets = [16, 0], sizes = [16, 8], strides = [1, 1]} : vector<32x8xf32> to vector<16x8xf32>
    %253 = vector.broadcast %70 : vector<1x8xf32> to vector<16x8xf32>
    %254 = arith.mulf %252, %253 : vector<16x8xf32>
    %255 = vector.broadcast %57 : vector<1x8xf32> to vector<16x8xf32>
    %256 = arith.addf %254, %255 : vector<16x8xf32>
    %c16 = arith.constant 16 : index
    %c0_65 = arith.constant 0 : index
    %257 = vector.load %arg3[%c16, %c0_65] : memref<32x8xf32, #tpu.memory_space<vmem>>, vector<16x8xf32>
    tpu.vector_store %arg3[%c16, %c0_65], %256 {strides = array<i32>} : memref<32x8xf32, #tpu.memory_space<vmem>>, vector<16x8xf32>,
    return
  }
}

</mosaic_0001>

<bundles_post_ra>
// kernel: mlp_encoder_forward.1
= control target key start
LH: loop header
LB: loop body
LE: loop exit
PB: predicated region body
PF: predicated region fallthrough
CT: control target
= control target key end

     0   :  { %vm189_vm0 = vcmask 64512   ;;  %v2357_v1 = vmov 0   ;;  %vm319_vm1 = vcmask 261120   ;;  %v2358_v46 = vmov 1   ;;  %s2366_s22 = smov 120   ;;  %s2367_s23 = smov 8   ;;  %s3396_s0 = inlined_call_operand.vmem [shape: f32[32,8], index: 0, kind: input, shape index: {}]   ;;  %s3397_s1 = inlined_call_operand.vmem [shape: bf16[160,64], index: 1, kind: input, shape index: {}]   ;;  %s3398_s2 = inlined_call_operand.vmem [shape: f32[96,16], index: 2, kind: input, shape index: {}]   ;;  %s3399_s3 = inlined_call_operand.vmem [shape: f32[32,8], index: 3, kind: output, shape index: {}]  }
   0x1   :  { %v187_v0 = vld [vmem:[%s3396_s0 + $0x10] sm:$0xff]  ;;  %2269 = vset.pattern.permute.xlu0 %v2357_v1  ;;  %2270 = vset.pattern.permute.xlu1 %v2357_v1  ;;  %v188_v2 = vld [vmem:[%s3396_s0 + $0x18] sm:$0xff]  ;;  %v185_v4 = vld [vmem:[%s3396_s0] sm:$0xff]  ;;  %v2359_v53 = vmov 2  }
   0x2   :  { %v220_v3 = vsel %vm189_vm0, %v187_v0, 0.0  ;;  %v186_v5 = vld [vmem:[%s3396_s0 + $0x8] sm:$0xff]  ;;  %v221_v6 = vsel %vm189_vm0, %v188_v2, 0.0  ;;  %v190_v7 = vsel %vm189_vm0, %v185_v4, 0.0  ;;  %v2323_v9 = vld [vmem:[%s3397_s1] sm:$0xff]   ;;  %v2422_v15 = vld [vmem:[%s3398_s2 + $0x10] sm:$0xff] }
   0x3   :  { %v191_v8 = vsel %vm189_vm0, %v186_v5, 0.0  ;;  %v222_v10 = vadd.f32 %v221_v6, %v220_v3  ;;  %2186 = vmatprep.mubr.msk.bf16.mxu0 %vm319_vm1, %v2323_v9  ;;  %v2417_v14 = vld [vmem:[%s3398_s2] sm:$0xff]  ;;  %276 = vperm.xlu1 %2270, %v2422_v15   ;;  %v2429_v18 = vld [vmem:[%s3398_s2 + $0x8] sm:$0xff]  ;;  %v2434_v19 = vld [vmem:[%s3398_s2 + $0x18] sm:$0xff] }
   0x4   :  { %v192_v11 = vadd.f32 %v191_v8, %v190_v7  ;;  %268 = vperm.xlu0 %2269, %v2417_v14   ;;  %v2439_v22 = vld [vmem:[%s3398_s2 + $0x20] sm:$0xff]  ;;  %v2444_v23 = vld [vmem:[%s3398_s2 + $0x28] sm:$0xff]  ;;  %v2453_v30 = vld [vmem:[%s3398_s2 + $0x30] sm:$0xff] }
   0x5   :  { %v223_v12 = vrot.slane %v222_v10, 4  ;;  %v2462_v33 = vld [vmem:[%s3398_s2 + $0x38] sm:$0xff] }
   0x6   :  { %v193_v13 = vrot.slane %v192_v11, 4  ;;  %v2088_v3 = vld [vmem:[%s3398_s2 + $0x58] ss:$0 sm:$0xff]  ;;  %v2089_v7 = vld [vmem:[%s3398_s2 + $0x59] ss:$0 sm:$0xff] }
   0x7   :  { %v224_v16 = vadd.f32 %v223_v12, %v222_v10  ;;  %280 = vperm.xlu1 %2270, %v2434_v19  }
   0x8   :  { %v194_v17 = vadd.f32 %v193_v13, %v192_v11  ;;  %272 = vperm.xlu0 %2269, %v2429_v18  }
   0x9   :  { %v225_v20 = vrot.slane %v224_v16, 2 }
   0xa   :  { %v195_v21 = vrot.slane %v194_v17, 2 }
   0xb   :  { %v226_v24 = vadd.f32 %v225_v20, %v224_v16  ;;  %288 = vperm.xlu1 %2270, %v2444_v23  }
   0xc   :  { %v196_v25 = vadd.f32 %v195_v21, %v194_v17  ;;  %284 = vperm.xlu0 %2269, %v2439_v22  }
   0xd   :  { %v227_v26 = vrot.slane %v226_v24, 1 }
   0xe   :  { %v197_v27 = vrot.slane %v196_v25, 1 }
   0xf   :  { %v228_v28 = vadd.f32 %v227_v26, %v226_v24  ;;  %296 = vperm.xlu1 %2270, %v2462_v33   ;;  %v2324_v26 = vld [vmem:[%s3397_s1 + $0x8] sm:$0xff]  }
  0x10   :  { %v198_v29 = vadd.f32 %v197_v27, %v196_v25  ;;  %292 = vperm.xlu0 %2269, %v2453_v30   ;;  %v2325_v27 = vld [vmem:[%s3397_s1 + $0x10] sm:$0xff]  }
  0x11   :  { %v2455_v31 = vmul.f32 0.0625, %v228_v28  ;;  %v2326_v28 = vld [vmem:[%s3397_s1 + $0x18] sm:$0xff]  }
  0x12   :  { %v2457_v32 = vmul.f32 0.0625, %v198_v29  ;;  %v23_v29 = vld [vmem:[%s3398_s2 + $0x40] sm:$0xff] }
  0x13   :  { %3434 = vst [vmem:[#allocation2_spill] sm:$0xff] %v2455_v31  ;;  %v230_v34 = vsub.f32 %v187_v0, %v2455_v31  ;;  %v231_v35 = vsub.f32 %v188_v2, %v2455_v31  ;;  %2272 = vset.pattern.permute.xlu1 %v2358_v46  ;;  %2194 = vmatprep.subr.mxu1 %v23_v29 }
  0x14   :  { %3435 = vst [vmem:[#allocation3_spill] sm:$0xff] %v2457_v32  ;;  %v201_v36 = vsub.f32 %v185_v4, %v2457_v32  ;;  %v202_v37 = vsub.f32 %v186_v5, %v2457_v32  ;;  %2271 = vset.pattern.permute.xlu0 %v2358_v46  ;;  %487 = vperm.xlu1 %2272, %v2429_v18  }
  0x15   :  { %v232_v38 = vmul.f32 %v230_v34, %v230_v34  ;;  %v233_v39 = vmul.f32 %v231_v35, %v231_v35  ;;  %483 = vperm.xlu0 %2271, %v2417_v14   ;;  %2195 = vmatpush3.msra.mxu1 %v23_v29 }
  0x16   :  { %v203_v40 = vmul.f32 %v201_v36, %v201_v36  ;;  %v204_v41 = vmul.f32 %v202_v37, %v202_v37 }
  0x17   :  { %v234_v42 = vsel %vm189_vm0, %v232_v38, 0.0  ;;  %v235_v43 = vsel %vm189_vm0, %v233_v39, 0.0 }
  0x18   :  { %v205_v44 = vsel %vm189_vm0, %v203_v40, 0.0  ;;  %v206_v45 = vsel %vm189_vm0, %v204_v41, 0.0  ;;  %v236_v47 = vadd.f32 %v235_v43, %v234_v42  ;;  %2273 = vset.pattern.permute.xlu1 %v2359_v53  ;;  %v2363_v40 = vmov 8  }
  0x19   :  { %v207_v48 = vadd.f32 %v206_v45, %v205_v44  ;;  %499 = vperm.xlu0 %2271, %v2439_v22   ;;  %523 = vperm.xlu1 %2273, %v2417_v14  }
  0x1a   :  { %v237_v49 = vrot.slane %v236_v47, 4 }
  0x1b   :  { %v208_v50 = vrot.slane %v207_v48, 4 }
  0x1c   :  { %v238_v51 = vadd.f32 %v237_v49, %v236_v47 }
  0x1d   :  { %v209_v52 = vadd.f32 %v208_v50, %v207_v48  ;;  %2276 = vset.pattern.permute.xlu0 %v2359_v53  ;;  %2274 = vset.pattern.permute.xlu1 %v2358_v46 }
  0x1e   :  { %v239_v54 = vrot.slane %v238_v51, 2  ;;  %527 = vperm.xlu0 %2276, %v2429_v18   ;;  %491 = vperm.xlu1 %2274, %v2422_v15  }
  0x1f   :  { %v210_v55 = vrot.slane %v209_v52, 2 }
  0x20   :  { %v240_v56 = vadd.f32 %v239_v54, %v238_v51 }
  0x21   :  { %v211_v57 = vadd.f32 %v210_v55, %v209_v52 }
  0x22   :  { %v241_v58 = vrot.slane %v240_v56, 1  ;;  %531 = vperm.xlu0 %2276, %v2422_v15   ;;  %495 = vperm.xlu1 %2274, %v2434_v19  }
  0x23   :  { %v212_v59 = vrot.slane %v211_v57, 1 }
  0x24   :  { %v242_v60 = vadd.f32 %v241_v58, %v240_v56 }
  0x25   :  { %v213_v61 = vadd.f32 %v212_v59, %v211_v57 }
  0x26   :  { %v243_v62 = vmul.f32 0.0625, %v242_v60  ;;  %543 = vperm.xlu0 %2276, %v2444_v23   ;;  %2275 = vset.pattern.permute.xlu1 %v2359_v53 }
  0x27   :  { %v214_v63 = vmul.f32 0.0625, %v213_v61  ;;  %535 = vperm.xlu1 %2275, %v2434_v19  }
  0x28   :  { %v2482_v0 = vadd.f32 1e-05, %v243_v62 }
  0x29   :  { %v2484_v1 = vadd.f32 1e-05, %v214_v63 }
  0x2a   :  { %3436 = vst [vmem:[#allocation4_spill] sm:$0xff] %v2482_v0  ;;  %2333 = vrsqrt.f32 %v2482_v0  ;;  %547 = vperm.xlu0 %2276, %v2453_v30  }
  0x2b   :  { %3437 = vst [vmem:[#allocation5_spill] sm:$0xff] %v2484_v1  ;;  %2335 = vrsqrt.f32 %v2484_v1  ;;  %2277 = vset.pattern.permute.xlu1 %v2358_v46 }
  0x2c   :  { %503 = vperm.xlu1 %2277, %v2444_v23  }
  0x30   :  { %2278 = vset.pattern.permute.xlu1 %v2359_v53 }
  0x31   :  { %539 = vperm.xlu1 %2278, %v2439_v22  }
  0x35   :  { %2279 = vset.pattern.permute.xlu1 %v2358_v46 }
  0x36   :  { %507 = vperm.xlu1 %2279, %v2453_v30  }
  0x37   :  { %v2493_v2 = vpop.eup %2333 }
  0x38   :  { %3438 = vst [vmem:[#allocation6_spill] sm:$0xff] %v2493_v2  ;;  %v2498_v4 = vpop.eup %2335  ;;  %v247_v5 = vmul.f32 %v2493_v2, %v230_v34  ;;  %v248_v6 = vmul.f32 %v2493_v2, %v231_v35  ;;  %v2360_v34 = vmov 4   ;;  %v2361_v35 = vmov 3  }
  0x39   :  { %3439 = vst [vmem:[#allocation7_spill] sm:$0xff] %v2498_v4  ;;  %v218_v8 = vmul.f32 %v2498_v4, %v201_v36  ;;  %v219_v9 = vmul.f32 %v2498_v4, %v202_v37  ;;  %2281 = vset.pattern.permute.xlu0 %v2360_v34  ;;  %v2362_v36 = vmov 5  }
  0x3a   :  { %v255_v10 = vmul.f32 %v2088_v3, %v247_v5  ;;  %v256_v11 = vmul.f32 %v2088_v3, %v248_v6  ;;  %511 = vperm.xlu1 %2279, %v2462_v33   ;;  %732 = vperm.xlu0 %2281, %v2417_v14  }
  0x3b   :  { %v253_v12 = vmul.f32 %v2088_v3, %v218_v8  ;;  %v254_v13 = vmul.f32 %v2088_v3, %v219_v9 }
  0x3c   :  { %v263_v16 = vadd.f32 %v2089_v7, %v255_v10  ;;  %v264_v17 = vadd.f32 %v2089_v7, %v256_v11 }
  0x3d   :  { %v261_v20 = vadd.f32 %v2089_v7, %v253_v12  ;;  %v262_v21 = vadd.f32 %v2089_v7, %v254_v13 }
  0x3e   :  { %v266_v24 = vpack.c.bf16 %v264_v17, %v263_v16  ;;  %2280 = vset.pattern.permute.xlu1 %v2359_v53  ;;  %744 = vperm.xlu0 %2281, %v2434_v19  }
  0x3f   :  { %v265_v25 = vpack.c.bf16 %v262_v21, %v261_v20  ;;  %551 = vperm.xlu1 %2280, %v2462_v33  }
  0x40   :  { %2182 = vmatprep.subr.bf16.mxu0 %v266_v24 }
  0x41   :  { %2183 = vmatpush3.bf16.msra.mxu0 %v266_v24 }
  0x42   :  { %2184 = vmatprep.subr.bf16.mxu0 %v265_v25  ;;  %752 = vperm.xlu0 %2281, %v2444_v23  }
  0x43   :  { %2282 = vset.pattern.permute.xlu1 %v2360_v34 }
  0x44   :  { %736 = vperm.xlu1 %2282, %v2429_v18  }
  0x45   :  { %2185 = vmatpush3.bf16.msra.mxu0 %v265_v25 }
  0x46   :  { %760 = vperm.xlu0 %2281, %v2462_v33  }
  0x48   :  { %2187 = vmatmul.mubr.msk.bf16.vlgmr.msra.gmra.mxu0 %vm319_vm1, %v2324_v26  ;;  %740 = vperm.xlu1 %2282, %v2422_v15  }
  0x49   :  { %2190 = vmatprep.mubr.msk.bf16.mxu0 %vm319_vm1, %v2325_v27 }
  0x4a   :  { %2284 = vset.pattern.permute.xlu0 %v2361_v35 }
  0x4b   :  { %696 = vperm.xlu0 %2284, %v2429_v18  }
  0x4c   :  { %748 = vperm.xlu1 %2282, %v2439_v22  }
  0x4f   :  { %704 = vperm.xlu0 %2284, %v2434_v19  }
  0x50   :  { %2191 = vmatmul.mubr.msk.bf16.gmra.mxu0 %vm319_vm1, %v2326_v28  ;;  %756 = vperm.xlu1 %2282, %v2453_v30   ;;  %v2364_v28 = vmov 6  }
  0x53   :  { %708 = vperm.xlu0 %2284, %v2439_v22  }
  0x54   :  { %2283 = vset.pattern.permute.xlu1 %v2361_v35 }
  0x55   :  { %692 = vperm.xlu1 %2283, %v2417_v14  }
  0x57   :  { %2287 = vset.pattern.permute.xlu0 %v2362_v36 }
  0x58   :  { %820 = vperm.xlu0 %2287, %v2422_v15  }
  0x59   :  { %700 = vperm.xlu1 %2283, %v2422_v15  }
  0x5c   :  { %824 = vperm.xlu0 %2287, %v2434_v19  }
  0x5d   :  { %2285 = vset.pattern.permute.xlu1 %v2362_v36 }
  0x5e   :  { %812 = vperm.xlu1 %2285, %v2417_v14  }
  0x60   :  { %828 = vperm.xlu0 %2287, %v2439_v22  }
  0x62   :  { %816 = vperm.xlu1 %2285, %v2429_v18  }
  0x64   :  { %832 = vperm.xlu0 %2287, %v2444_v23  }
  0x66   :  { %2286 = vset.pattern.permute.xlu1 %v2363_v40 }
  0x67   :  { %70 = vperm.xlu1 %2286, %v2417_v14  }
  0x68   :  { %2291 = vset.pattern.permute.xlu0 %v2363_v40 }
  0x69   :  { %78 = vperm.xlu0 %2291, %v2422_v15  }
  0x6b   :  { %74 = vperm.xlu1 %2286, %v2429_v18  }
  0x6d   :  { %86 = vperm.xlu0 %2291, %v2439_v22  }
  0x6f   :  { %2288 = vset.pattern.permute.xlu1 %v2361_v35 }
  0x70   :  { %712 = vperm.xlu1 %2288, %v2444_v23  }
  0x71   :  { %90 = vperm.xlu0 %2291, %v2444_v23  }
  0x74   :  { %716 = vperm.xlu1 %2288, %v2453_v30  }
  0x75   :  { %2294 = vset.pattern.permute.xlu0 %v2364_v28 }
  0x76   :  { %892 = vperm.xlu0 %2294, %v2417_v14  }
  0x78   :  { %2289 = vset.pattern.permute.xlu1 %v2363_v40 }
  0x79   :  { %82 = vperm.xlu1 %2289, %v2434_v19  }
  0x7d   :  { %2290 = vset.pattern.permute.xlu1 %v2361_v35 }
  0x7e   :  { %v277_v38 = vpop.permute.xlu1 %276  ;;  %720 = vperm.xlu1 %2290, %v2462_v33  }
  0x7f   :  { %v269_v37 = vpop.permute.xlu0 %268 }
  0x82   :  { %v281_v43 = vpop.permute.xlu1 %280  ;;  %2292 = vset.pattern.permute.xlu1 %v2362_v36 }
  0x83   :  { %v273_v41 = vpop.permute.xlu0 %272  ;;  %836 = vperm.xlu1 %2292, %v2453_v30  }
  0x86   :  { %v289_v54 = vpop.permute.xlu1 %288 }
  0x87   :  { %v285_v49 = vpop.permute.xlu0 %284  ;;  %840 = vperm.xlu1 %2292, %v2462_v33  }
  0x8a   :  { %v297_v7 = vpop.permute.xlu1 %296 }
  0x8b   :  { %v293_v62 = vpop.permute.xlu0 %292  ;;  %2293 = vset.pattern.permute.xlu1 %v2363_v40 }
  0x8c   :  { %94 = vperm.xlu1 %2293, %v2453_v30  }
  0x90   :  { %98 = vperm.xlu1 %2293, %v2462_v33  }
  0x94   :  { %2295 = vset.pattern.permute.xlu1 %v2364_v28 }
  0x95   :  { %896 = vperm.xlu1 %2295, %v2429_v18  }
  0x99   :  { %900 = vperm.xlu1 %2295, %v2422_v15  }
 0x108   :  { %v2188_v39 = vpop.f32.mrf.mxu0 }
 0x109   :  { %v375_v47 = vadd.f32 %v2188_v39, %v277_v38 }
 0x10a   :  { %v366_v42 = vpop.f32.mrf.mxu0 }
 0x10b   :  { %v367_v45 = vadd.f32 %v366_v42, %v269_v37  ;;  %v400_v57 = vsel %vm189_vm0, %v375_v47, 0.0 }
 0x10c   :  { %v2189_v44 = vpop.f32.mrf.mxu0 }
 0x10d   :  { %v397_v51 = vsel %vm189_vm0, %v367_v45, 0.0  ;;  %v378_v52 = vadd.f32 %v2189_v44, %v281_v43  ;;  %v2365_v43 = vmov 7  }
 0x10e   :  { %v369_v46 = vpop.f32.mrf.mxu0  ;;  %2296 = vset.pattern.permute.xlu0 %v2365_v43 }
 0x10f   :  { %v370_v48 = vadd.f32 %v369_v46, %v273_v41  ;;  %v402_v60 = vsel %vm189_vm0, %v378_v52, 0.0  ;;  %31 = vperm.xlu0 %2296, %v2417_v14  }
 0x110   :  { %v2192_v50 = vpop.f32.mrf.mxu0 }
 0x111   :  { %v398_v53 = vsel %vm189_vm0, %v370_v48, 0.0  ;;  %v391_v5 = vadd.f32 %v2192_v50, %v293_v62 }
 0x112   :  { %v399_v55 = vadd.f32 %v398_v53, %v397_v51  ;;  %v382_v56 = vpop.f32.mrf.mxu0 }
 0x113   :  { %v2558_v61 = vadd.f32 %v382_v56, %v285_v49  ;;  %v443_v16 = vsel %vm189_vm0, %v391_v5, 0.0 }
 0x114   :  { %v401_v58 = vadd.f32 %v400_v57, %v399_v55  ;;  %v2193_v59 = vpop.f32.mrf.mxu0 }
 0x115   :  { %v440_v9 = vsel %vm189_vm0, %v2558_v61, 0.0  ;;  %v394_v10 = vadd.f32 %v2193_v59, %v297_v7 }
 0x116   :  { %v403_v63 = vadd.f32 %v402_v60, %v401_v58  ;;  %v385_v3 = vpop.f32.mrf.mxu0 }
 0x117   :  { %v386_v6 = vadd.f32 %v385_v3, %v289_v54  ;;  %v445_v21 = vsel %vm189_vm0, %v394_v10, 0.0 }
 0x118   :  { %v404_v8 = vrot.slane %v403_v63, 4 }
 0x119   :  { %v441_v11 = vsel %vm189_vm0, %v386_v6, 0.0 }
 0x11a   :  { %v405_v12 = vadd.f32 %v404_v8, %v403_v63  ;;  %v442_v13 = vadd.f32 %v441_v11, %v440_v9 }
 0x11c   :  { %v406_v17 = vrot.slane %v405_v12, 2  ;;  %v444_v20 = vadd.f32 %v443_v16, %v442_v13 }
 0x11e   :  { %v407_v24 = vadd.f32 %v406_v17, %v405_v12  ;;  %v446_v25 = vadd.f32 %v445_v21, %v444_v20 }
 0x120   :  { %v408_v26 = vrot.slane %v407_v24, 1  ;;  %v447_v27 = vrot.slane %v446_v25, 4 }
 0x122   :  { %v409_v29 = vadd.f32 %v408_v26, %v407_v24  ;;  %v448_v34 = vadd.f32 %v447_v27, %v446_v25 }
 0x124   :  { %v411_v37 = vmul.f32 0.03125, %v409_v29  ;;  %v449_v38 = vrot.slane %v448_v34, 2 }
 0x126   :  { %v2577_v39 = vsub.f32 %v367_v45, %v411_v37  ;;  %v2579_v35 = vsub.f32 %v370_v48, %v411_v37  ;;  %v2581_v41 = vsub.f32 %v375_v47, %v411_v37  ;;  %v2583_v42 = vsub.f32 %v378_v52, %v411_v37  ;;  %v2593_v47 = vpop.permute.xlu1 %487 }
 0x127   :  { %v450_v44 = vadd.f32 %v449_v38, %v448_v34 }
 0x128   :  { %v416_v46 = vmul.f32 %v2577_v39, %v2577_v39  ;;  %v417_v36 = vmul.f32 %v2579_v35, %v2579_v35  ;;  %v418_v45 = vmul.f32 %v2581_v41, %v2581_v41  ;;  %v419_v49 = vmul.f32 %v2583_v42, %v2583_v42 }
 0x129   :  { %v451_v48 = vrot.slane %v450_v44, 1 }
 0x12a   :  { %v420_v50 = vsel %vm189_vm0, %v416_v46, 0.0  ;;  %v421_v51 = vsel %vm189_vm0, %v417_v36, 0.0  ;;  %v423_v54 = vsel %vm189_vm0, %v418_v45, 0.0  ;;  %v425_v57 = vsel %vm189_vm0, %v419_v49, 0.0  ;;  %v524_v62 = vpop.permute.xlu1 %523  ;;  %v484_v46 = vpop.permute.xlu0 %483 }
 0x12b   :  { %v422_v52 = vadd.f32 %v421_v51, %v420_v50  ;;  %v452_v53 = vadd.f32 %v451_v48, %v450_v44 }
 0x12d   :  { %v424_v55 = vadd.f32 %v423_v54, %v422_v52  ;;  %v453_v56 = vmul.f32 0.03125, %v452_v53 }
 0x12e   :  { %v500_v50 = vpop.permute.xlu0 %499 }
 0x12f   :  { %v426_v58 = vadd.f32 %v425_v57, %v424_v55  ;;  %v2604_v59 = vsub.f32 %v386_v6, %v453_v56  ;;  %v2606_v60 = vsub.f32 %v391_v5, %v453_v56  ;;  %v2608_v63 = vsub.f32 %v394_v10, %v453_v56 }
 0x130   :  { %v454_v3 = vsub.f32 %v2558_v61, %v453_v56  ;;  %v492_v61 = vpop.permute.xlu1 %491 }
 0x131   :  { %v427_v7 = vrot.slane %v426_v58, 4  ;;  %v459_v8 = vmul.f32 %v2604_v59, %v2604_v59  ;;  %v460_v40 = vmul.f32 %v2606_v60, %v2606_v60  ;;  %v461_v5 = vmul.f32 %v2608_v63, %v2608_v63 }
 0x132   :  { %v458_v9 = vmul.f32 %v454_v3, %v454_v3  ;;  %v528_v54 = vpop.permute.xlu0 %527 }
 0x133   :  { %v428_v11 = vadd.f32 %v427_v7, %v426_v58  ;;  %v463_v6 = vsel %vm189_vm0, %v459_v8, 0.0  ;;  %v465_v16 = vsel %vm189_vm0, %v460_v40, 0.0  ;;  %v467_v21 = vsel %vm189_vm0, %v461_v5, 0.0 }
 0x134   :  { %v462_v10 = vsel %vm189_vm0, %v458_v9, 0.0  ;;  %v496_v27 = vpop.permute.xlu1 %495 }
 0x135   :  { %v429_v12 = vrot.slane %v428_v11, 2  ;;  %v464_v13 = vadd.f32 %v463_v6, %v462_v10 }
 0x136   :  { %v532_v6 = vpop.permute.xlu0 %531 }
 0x137   :  { %v430_v17 = vadd.f32 %v429_v12, %v428_v11  ;;  %v466_v20 = vadd.f32 %v465_v16, %v464_v13 }
 0x138   :  { %v536_v45 = vpop.permute.xlu1 %535 }
 0x139   :  { %v431_v24 = vrot.slane %v430_v17, 1  ;;  %v468_v25 = vadd.f32 %v467_v21, %v466_v20 }
 0x13b   :  { %v432_v26 = vadd.f32 %v431_v24, %v430_v17  ;;  %v469_v29 = vrot.slane %v468_v25, 4 }
 0x13c   :  { %v504_v52 = vpop.permute.xlu1 %503 }
 0x13d   :  { %v433_v34 = vmul.f32 0.03125, %v432_v26  ;;  %v470_v37 = vadd.f32 %v469_v29, %v468_v25 }
 0x13f   :  { %v434_v38 = vadd.f32 1e-05, %v433_v34  ;;  %v471_v44 = vrot.slane %v470_v37, 2 }
 0x140   :  { %v540_v55 = vpop.permute.xlu1 %539 }
 0x141   :  { %2337 = vrsqrt.f32 %v434_v38  ;;  %v472_v36 = vadd.f32 %v471_v44, %v470_v37 }
 0x143   :  { %v473_v48 = vrot.slane %v472_v36, 1 }
 0x144   :  { %v508_v10 = vpop.permute.xlu1 %507 }
 0x145   :  { %v474_v49 = vadd.f32 %v473_v48, %v472_v36 }
 0x147   :  { %v475_v51 = vmul.f32 0.03125, %v474_v49 }
 0x148   :  { %v512_v17 = vpop.permute.xlu1 %511 }
 0x149   :  { %v476_v53 = vadd.f32 1e-05, %v475_v51 }
 0x14b   :  { %2339 = vrsqrt.f32 %v476_v53 }
 0x14c   :  { %v552_v37 = vpop.permute.xlu1 %551 }
 0x14e   :  { %v2338_v56 = vpop.eup %2337 }
 0x14f   :  { %v437_v57 = vmul.f32 %v2338_v56, %v2579_v35  ;;  %v438_v58 = vmul.f32 %v2338_v56, %v2581_v41  ;;  %v436_v7 = vmul.f32 %v2338_v56, %v2577_v39  ;;  %v439_v8 = vmul.f32 %v2338_v56, %v2583_v42  ;;  %v544_v41 = vpop.permute.xlu0 %543 }
 0x151   :  { %v515_v9 = vmul.f32 %v2593_v47, %v437_v57  ;;  %v516_v40 = vmul.f32 %v492_v61, %v438_v58  ;;  %v514_v11 = vmul.f32 %v484_v46, %v436_v7  ;;  %v517_v13 = vmul.f32 %v496_v27, %v439_v8 }
 0x153   :  { %v555_v5 = vadd.f32 %v528_v54, %v515_v9  ;;  %v554_v12 = vadd.f32 %v524_v62, %v514_v11  ;;  %v556_v16 = vadd.f32 %v532_v6, %v516_v40  ;;  %v557_v39 = vadd.f32 %v536_v45, %v517_v13  ;;  %v548_v27 = vpop.permute.xlu0 %547 }
 0x155   :  { %2196 = vmatprep.mubr.msk.f32.mxu1 %vm189_vm0, %v554_v12  ;;  %v2368_v12 = vmov 10  }
 0x156   :  { %2197 = vmatmul.mubr.msk.f32.vlgmr.msra.gmra.mxu1 %vm189_vm0, %v555_v5 }
 0x157   :  { %2199 = vmatprep.mubr.msk.f32.mxu1 %vm189_vm0, %v556_v16 }
 0x158   :  { %v2340_v35 = vpop.eup %2339 }
 0x159   :  { %v478_v42 = vmul.f32 %v2340_v35, %v454_v3  ;;  %v479_v47 = vmul.f32 %v2340_v35, %v2604_v59  ;;  %v480_v61 = vmul.f32 %v2340_v35, %v2606_v60  ;;  %v481_v20 = vmul.f32 %v2340_v35, %v2608_v63  ;;  %v733_v60 = vpop.permute.xlu0 %732  ;;  %v737_v63 = vpop.permute.xlu1 %736 }
 0x15a   :  { %2200 = vmatmul.mubr.msk.f32.gmra.mxu1 %vm189_vm0, %v557_v39 }
 0x15b   :  { %v518_v62 = vmul.f32 %v500_v50, %v478_v42  ;;  %v519_v21 = vmul.f32 %v504_v52, %v479_v47  ;;  %v520_v24 = vmul.f32 %v508_v10, %v480_v61  ;;  %v521_v29 = vmul.f32 %v512_v17, %v481_v20 }
 0x15d   :  { %v558_v25 = vadd.f32 %v540_v55, %v518_v62  ;;  %v559_v26 = vadd.f32 %v544_v41, %v519_v21  ;;  %v560_v34 = vadd.f32 %v548_v27, %v520_v24  ;;  %v561_v59 = vadd.f32 %v552_v37, %v521_v29  ;;  %v745_v44 = vpop.permute.xlu0 %744  ;;  %v741_v48 = vpop.permute.xlu1 %740 }
 0x15f   :  { %2202 = vmatprep.mubr.msk.f32.mxu1 %vm189_vm0, %v558_v25 }
 0x160   :  { %2203 = vmatmul.mubr.msk.f32.gmra.mxu1 %vm189_vm0, %v559_v26 }
 0x161   :  { %2205 = vmatprep.mubr.msk.f32.mxu1 %vm189_vm0, %v560_v34  ;;  %v753_v50 = vpop.permute.xlu0 %752  ;;  %v749_v52 = vpop.permute.xlu1 %748 }
 0x164   :  { %2206 = vmatmul.mubr.msk.f32.gmra.mxu1 %vm189_vm0, %v561_v59 }
 0x165   :  { %v761_v55 = vpop.permute.xlu0 %760  ;;  %v757_v8 = vpop.permute.xlu1 %756 }
 0x169   :  { %v2674_v11 = vpop.permute.xlu1 %692  ;;  %v697_v35 = vpop.permute.xlu0 %696 }
 0x16d   :  { %v2680_v5 = vpop.permute.xlu1 %700  ;;  %v705_v39 = vpop.permute.xlu0 %704 }
 0x171   :  { %v2686_v10 = vpop.permute.xlu1 %812  ;;  %v2706_v42 = vpop.permute.xlu0 %708 }
 0x175   :  { %v817_v13 = vpop.permute.xlu1 %816 }
 0x179   :  { %v2694_v16 = vpop.permute.xlu1 %70 }
 0x216   :  { %v2641_v3 = vpop.f32.mrf.mxu1 }
 0x217   :  { %v764_v38 = vmul.f32 %v2641_v3, %v737_v63  ;;  %v724_v37 = vmul.f32 %v2641_v3, %v697_v35 }
 0x218   :  { %v2644_v46 = vpop.f32.mrf.mxu1 }
 0x219   :  { %781 = vrot.lane.b32.xlu1 %v764_v38, %s2366_s22  ;;  %v763_v36 = vmul.f32 %v733_v60, %v2644_v46  ;;  %v723_v63 = vmul.f32 %v2674_v11, %v2644_v46 }
 0x21a   :  { %v2648_v45 = vpop.f32.mrf.mxu1 }
 0x21b   :  { %779 = vrot.lane.b32.xlu0 %v763_v36, %s2366_s22  ;;  %v766_v54 = vmul.f32 %v2648_v45, %v745_v44 }
 0x21c   :  { %v2651_v49 = vpop.f32.mrf.mxu1 }
 0x21d   :  { %861 = vrot.lane.b32.xlu1 %v764_v38, %s2367_s23  ;;  %v765_v7 = vmul.f32 %v741_v48, %v2651_v49 }
 0x21f   :  { %36 = vperm.xlu0 %2296, %v2429_v18  }
 0x220   :  { %v2655_v51 = vpop.f32.mrf.mxu1 }
 0x221   :  { %859 = vrot.lane.b32.xlu1 %v763_v36, %s2367_s23  ;;  %v768_v40 = vmul.f32 %v2655_v51, %v753_v50 }
 0x222   :  { %v2658_v53 = vpop.f32.mrf.mxu1 }
 0x223   :  { %v767_v6 = vmul.f32 %v749_v52, %v2658_v53 }
 0x224   :  { %v2661_v56 = vpop.f32.mrf.mxu1 }
 0x225   :  { %785 = vrot.lane.b32.xlu1 %v766_v54, %s2366_s22  ;;  %v770_v57 = vmul.f32 %v2661_v56, %v761_v55 }
 0x226   :  { %v2665_v58 = vpop.f32.mrf.mxu1 }
 0x227   :  { %793 = vrot.lane.b32.xlu0 %v770_v57, %s2366_s22  ;;  %v769_v9 = vmul.f32 %v757_v8, %v2665_v58  ;;  %v2763_v8 = vmul.f32 %v2648_v45, %v705_v39 }
 0x229   :  { %783 = vrot.lane.b32.xlu1 %v765_v7, %s2366_s22 }
 0x22b   :  { %791 = vrot.lane.b32.xlu0 %v769_v9, %s2366_s22 }
 0x22d   :  { %789 = vrot.lane.b32.xlu1 %v768_v40, %s2366_s22 }
 0x22f   :  { %863 = vrot.lane.b32.xlu0 %v765_v7, %s2367_s23 }
 0x231   :  { %787 = vrot.lane.b32.xlu1 %v767_v6, %s2366_s22 }
 0x233   :  { %46 = vperm.xlu0 %2296, %v2434_v19  }
 0x235   :  { %904 = vperm.xlu1 %2295, %v2434_v19  }
 0x237   :  { %867 = vrot.lane.b32.xlu0 %v767_v6, %s2367_s23 }
 0x239   :  { %2297 = vset.pattern.permute.xlu1 %v2365_v43 }
 0x23a   :  { %41 = vperm.xlu1 %2297, %v2422_v15  }
 0x23b   :  { %51 = vperm.xlu0 %2296, %v2439_v22  }
 0x23e   :  { %865 = vrot.lane.b32.xlu1 %v766_v54, %s2367_s23 }
 0x23f   :  { %2301 = vset.pattern.permute.xlu0 %v2368_v12  ;;  %2298 = vset.pattern.permute.xlu1 %v2364_v28 }
 0x240   :  { %134 = vperm.xlu0 %2301, %v2417_v14   ;;  %v2701_v14 = vpop.permute.xlu1 %74 }
 0x242   :  { %908 = vperm.xlu1 %2298, %v2439_v22  }
 0x244   :  { %869 = vrot.lane.b32.xlu0 %v768_v40, %s2367_s23  ;;  %v713_v41 = vpop.permute.xlu1 %712 }
 0x246   :  { %2299 = vset.pattern.permute.xlu1 %v2368_v12 }
 0x247   :  { %138 = vperm.xlu1 %2299, %v2429_v18  }
 0x248   :  { %146 = vperm.xlu0 %2301, %v2434_v19   ;;  %v2710_v19 = vpop.permute.xlu1 %716 }
 0x24b   :  { %2300 = vset.pattern.permute.xlu1 %v2364_v28 }
 0x24c   :  { %912 = vperm.xlu1 %2300, %v2444_v23   ;;  %150 = vperm.xlu0 %2301, %v2439_v22   ;;  %v821_v22 = vpop.permute.xlu0 %820  ;;  %v2714_v47 = vpop.permute.xlu1 %82 }
 0x250   :  { %2302 = vset.pattern.permute.xlu1 %v2368_v12  ;;  %154 = vperm.xlu0 %2301, %v2444_v23   ;;  %v721_v61 = vpop.permute.xlu1 %720 }
 0x251   :  { %142 = vperm.xlu1 %2302, %v2422_v15   ;;  %v825_v15 = vpop.permute.xlu0 %824 }
 0x254   :  { %158 = vperm.xlu0 %2301, %v2453_v30   ;;  %v2723_v20 = vpop.permute.xlu1 %836 }
 0x255   :  { %2303 = vset.pattern.permute.xlu1 %v2364_v28  ;;  %v2720_v17 = vpop.permute.xlu0 %828 }
 0x256   :  { %916 = vperm.xlu1 %2303, %v2453_v30  }
 0x259   :  { %v833_v62 = vpop.permute.xlu0 %832 }
 0x25a   :  { %2304 = vset.pattern.permute.xlu1 %v2365_v43 }
 0x25b   :  { %56 = vperm.xlu1 %2304, %v2444_v23   ;;  %v841_v23 = vpop.permute.xlu1 %840 }
 0x25d   :  { %v2726_v21 = vpop.permute.xlu0 %78 }
 0x25f   :  { %2305 = vset.pattern.permute.xlu1 %v2364_v28  ;;  %v2369_v28 = vmov 9  }
 0x260   :  { %920 = vperm.xlu1 %2305, %v2462_v33  }
 0x264   :  { %2306 = vset.pattern.permute.xlu1 %v2365_v43  ;;  %v2730_v43 = vpop.permute.xlu1 %94 }
 0x265   :  { %61 = vperm.xlu1 %2306, %v2453_v30   ;;  %v2732_v30 = vpop.permute.xlu0 %86 }
 0x268   :  { %v2734_v24 = vpop.permute.xlu1 %98 }
 0x269   :  { %873 = vrot.lane.b32.xlu1 %v770_v57, %s2367_s23  ;;  %v2736_v25 = vpop.permute.xlu0 %90 }
 0x26c   :  { %v897_v26 = vpop.permute.xlu1 %896 }
 0x26d   :  { %66 = vperm.xlu1 %2306, %v2462_v33   ;;  %v2738_v27 = vpop.permute.xlu0 %892 }
 0x270   :  { %v2740_v29 = vpop.permute.xlu1 %900 }
 0x271   :  { %871 = vrot.lane.b32.xlu1 %v769_v9, %s2367_s23  ;;  %v2742_v34 = vpop.permute.xlu0 %31 }
 0x272   :  { %2307 = vset.pattern.permute.xlu1 %v2369_v28 }
 0x28b   :  { %v782_v59 = vpop.permute.xlu1 %781 }
 0x28c   :  { %v804_v60 = vsub.f32 %v724_v37, %v782_v59  ;;  %v2774_v59 = vmul.f32 %v2661_v56, %v721_v61 }
 0x28d   :  { %v780_v38 = vpop.permute.xlu0 %779 }
 0x28e   :  { %v2747_v44 = vadd.f32 %v817_v13, %v804_v60  ;;  %v803_v36 = vsub.f32 %v723_v63, %v780_v38  ;;  %v2779_v38 = vmul.f32 %v2655_v51, %v713_v41 }
 0x28f   :  { %v862_v48 = vpop.permute.xlu1 %861 }
 0x290   :  { %v3407_v50 = vmax.f32 %v2747_v44, 0.0  ;;  %v2751_v52 = vadd.f32 %v2686_v10, %v803_v36  ;;  %v725_v10 = vmul.f32 %v2680_v5, %v2651_v49 }
 0x292   :  { %v3406_v54 = vmax.f32 %v2751_v52, 0.0  ;;  %v1012_v55 = vmul.f32 %v3407_v50, %v2701_v14 }
 0x293   :  { %v860_v57 = vpop.permute.xlu1 %859 }
 0x294   :  { %v1011_v7 = vmul.f32 %v3406_v54, %v2694_v16  ;;  %1029 = vrot.lane.b32.xlu0 %v1012_v55, %s2367_s23 }
 0x296   :  { %1027 = vrot.lane.b32.xlu1 %v1011_v7, %s2367_s23 }
 0x297   :  { %v786_v9 = vpop.permute.xlu1 %785 }
 0x298   :  { %v806_v40 = vsub.f32 %v2763_v8, %v786_v9 }
 0x29a   :  { %v2766_v11 = vadd.f32 %v825_v15, %v806_v40  ;;  %v2768_v6 = vpop.permute.xlu0 %36  ;;  %v727_v40 = vmul.f32 %v2706_v42, %v2658_v53 }
 0x29b   :  { %v784_v12 = vpop.permute.xlu1 %783 }
 0x29c   :  { %v3404_v13 = vmax.f32 %v2766_v11, 0.0  ;;  %v805_v35 = vsub.f32 %v725_v10, %v784_v12 }
 0x29e   :  { %v2776_v60 = vadd.f32 %v821_v22, %v805_v35  ;;  %v794_v39 = vpop.permute.xlu0 %793  ;;  %v1014_v15 = vmul.f32 %v3404_v13, %v2714_v47  ;;  %v2790_v22 = vmul.f32 %v2710_v19, %v2665_v58  ;;  %v884_v19 = vadd.f32 %v862_v48, %v724_v37 }
 0x29f   :  { %v810_v36 = vsub.f32 %v2774_v59, %v794_v39  ;;  %v790_v5 = vpop.permute.xlu1 %789  ;;  %v883_v48 = vadd.f32 %v860_v57, %v723_v63 }
 0x2a0   :  { %v3405_v55 = vmax.f32 %v2776_v60, 0.0  ;;  %v808_v7 = vsub.f32 %v2779_v38, %v790_v5  ;;  %1033 = vrot.lane.b32.xlu0 %v1014_v15, %s2367_s23  ;;  %v2817_v37 = vadd.f32 %v897_v26, %v884_v19 }
 0x2a1   :  { %v2792_v61 = vadd.f32 %v841_v23, %v810_v36  ;;  %v2831_v26 = vadd.f32 %v2738_v27, %v883_v48 }
 0x2a2   :  { %v2794_v41 = vadd.f32 %v833_v62, %v808_v7  ;;  %v792_v9 = vpop.permute.xlu0 %791  ;;  %v1013_v12 = vmul.f32 %v3405_v55, %v2726_v21 }
 0x2a3   :  { %v809_v35 = vsub.f32 %v2790_v22, %v792_v9  ;;  %v788_v39 = vpop.permute.xlu1 %787  ;;  %v3401_v62 = vmax.f32 %v2792_v61, 0.0 }
 0x2a4   :  { %v3402_v15 = vmax.f32 %v2794_v41, 0.0  ;;  %v807_v5 = vsub.f32 %v727_v40, %v788_v39  ;;  %1031 = vrot.lane.b32.xlu0 %v1013_v12, %s2367_s23 }
 0x2a5   :  { %v2809_v42 = vadd.f32 %v2723_v20, %v809_v35 }
 0x2a6   :  { %v1016_v23 = vmul.f32 %v3402_v15, %v2736_v25  ;;  %v2812_v36 = vadd.f32 %v2720_v17, %v807_v5  ;;  %v864_v7 = vpop.permute.xlu0 %863  ;;  %v1018_v17 = vmul.f32 %v3401_v62, %v2734_v24 }
 0x2a7   :  { %v3400_v12 = vmax.f32 %v2809_v42, 0.0  ;;  %v885_v35 = vadd.f32 %v864_v7, %v725_v10 }
 0x2a8   :  { %v3403_v9 = vmax.f32 %v2812_v36, 0.0  ;;  %1037 = vrot.lane.b32.xlu1 %v1016_v23, %s2367_s23  ;;  %162 = vperm.xlu0 %2301, %v2462_v33   ;;  %v3411_v33 = vmax.f32 %v2817_v37, 0.0 }
 0x2a9   :  { %v1017_v63 = vmul.f32 %v3400_v12, %v2730_v43  ;;  %v2837_v57 = vadd.f32 %v2740_v29, %v885_v35  ;;  %v2852_v29 = vld [vmem:[%s3398_s2] sm:$0xff] }
 0x2aa   :  { %v1015_v20 = vmul.f32 %v3403_v9, %v2732_v30  ;;  %v948_v19 = vmul.f32 %v3411_v33, %v2701_v14  ;;  %3440 = vst [vmem:[#allocation8_spill] sm:$0xff] %v2852_v29 }
 0x2ab   :  { %v3409_v5 = vmax.f32 %v2837_v57, 0.0 }
 0x2ac   :  { %1035 = vrot.lane.b32.xlu1 %v1015_v20, %s2367_s23  ;;  %1041 = vrot.lane.b32.xlu0 %v1018_v17, %s2367_s23 }
 0x2ad   :  { %2308 = vset.pattern.permute.xlu0 %v2369_v28  ;;  %v3410_v28 = vmax.f32 %v2831_v26, 0.0  ;;  %v949_v7 = vmul.f32 %v3409_v5, %v2726_v21 }
 0x2ae   :  { %v2839_v10 = vpop.permute.xlu0 %46 }
 0x2af   :  { %v947_v23 = vmul.f32 %v3410_v28, %v2694_v16 }
 0x2b0   :  { %v905_v39 = vpop.permute.xlu1 %904  ;;  %106 = vperm.xlu0 %2308, %v2429_v18   ;;  %1039 = vrot.lane.b32.xlu1 %v1017_v63, %s2367_s23 }
 0x2b2   :  { %v868_v27 = vpop.permute.xlu0 %867 }
 0x2b3   :  { %v887_v17 = vadd.f32 %v868_v27, %v727_v40 }
 0x2b4   :  { %965 = vrot.lane.b32.xlu0 %v948_v19, %s2366_s22  ;;  %102 = vperm.xlu1 %2307, %v2852_v29   ;;  %v2873_v19 = vld [vmem:[%s3398_s2 + $0x10] sm:$0xff] }
 0x2b5   :  { %v2855_v18 = vpop.permute.xlu1 %41  ;;  %3441 = vst [vmem:[#allocation9_spill] sm:$0xff] %v2873_v19 }
 0x2b6   :  { %v2863_v48 = vpop.permute.xlu0 %51 }
 0x2b8   :  { %967 = vrot.lane.b32.xlu0 %v949_v7, %s2366_s22  ;;  %963 = vrot.lane.b32.xlu1 %v947_v23, %s2366_s22 }
 0x2b9   :  { %v866_v20 = vpop.permute.xlu1 %865 }
 0x2ba   :  { %v886_v35 = vadd.f32 %v866_v20, %v2763_v8  ;;  %v2885_v8 = vld [vmem:[%s3398_s2 + $0x18] sm:$0xff]  ;;  %v2898_v20 = vld [vmem:[%s3398_s2 + $0x20] sm:$0xff] }
 0x2bb   :  { %v2876_v12 = vpop.permute.xlu0 %134  ;;  %3442 = vst [vmem:[#allocation10_spill] sm:$0xff] %v2885_v8  ;;  %3443 = vst [vmem:[#allocation11_spill] sm:$0xff] %v2898_v20 }
 0x2bc   :  { %v2868_v63 = vadd.f32 %v905_v39, %v886_v35  ;;  %110 = vperm.xlu1 %2307, %v2873_v19  }
 0x2bd   :  { %v909_v62 = vpop.permute.xlu1 %908 }
 0x2be   :  { %v934_v7 = vmax.f32 %v2868_v63, 0.0  ;;  %v2879_v15 = vadd.f32 %v909_v62, %v887_v17 }
 0x2bf   :  { %v870_v27 = vpop.permute.xlu0 %869 }
 0x2c0   :  { %v3408_v23 = vmax.f32 %v2879_v15, 0.0  ;;  %114 = vperm.xlu1 %2307, %v2885_v8   ;;  %v950_v40 = vmul.f32 %v934_v7, %v2714_v47  ;;  %v888_v35 = vadd.f32 %v870_v27, %v2779_v38  ;;  %v2915_v38 = vld [vmem:[%s3398_s2 + $0x30] sm:$0xff]  ;;  %v2922_v27 = vld [vmem:[%s3398_s2 + $0x38] sm:$0xff] }
 0x2c1   :  { %3445 = vst [vmem:[#allocation13_spill] sm:$0xff] %v2915_v38  ;;  %3446 = vst [vmem:[#allocation14_spill] sm:$0xff] %v2922_v27 }
 0x2c2   :  { %969 = vrot.lane.b32.xlu0 %v950_v40, %s2366_s22  ;;  %v2890_v39 = vpop.permute.xlu1 %138  ;;  %v951_v62 = vmul.f32 %v3408_v23, %v2732_v30  ;;  %v2906_v40 = vld [vmem:[%s3398_s2 + $0x28] sm:$0xff] }
 0x2c3   :  { %3444 = vst [vmem:[#allocation12_spill] sm:$0xff] %v2906_v40  ;;  %v2935_v4 = vpop.permute.xlu0 %146 }
 0x2c4   :  { %118 = vperm.xlu1 %2307, %v2898_v20  }
 0x2c6   :  { %971 = vrot.lane.b32.xlu0 %v951_v62, %s2366_s22 }
 0x2c7   :  { %v913_v17 = vpop.permute.xlu1 %912 }
 0x2c8   :  { %v928_v63 = vadd.f32 %v913_v17, %v888_v35  ;;  %122 = vperm.xlu1 %2307, %v2906_v40  }
 0x2ca   :  { %v936_v9 = vmax.f32 %v928_v63, 0.0 }
 0x2cc   :  { %v952_v13 = vmul.f32 %v936_v9, %v2736_v25  ;;  %v2910_v55 = vpop.permute.xlu1 %142  ;;  %126 = vperm.xlu1 %2307, %v2915_v38  }
 0x2ce   :  { %973 = vrot.lane.b32.xlu0 %v952_v13, %s2366_s22 }
 0x2d0   :  { %130 = vperm.xlu1 %2307, %v2922_v27  }
 0x2d1   :  { %v917_v62 = vpop.permute.xlu1 %916 }
 0x2d6   :  { %v2925_v35 = vpop.permute.xlu1 %56 }
 0x2db   :  { %v921_v17 = vpop.permute.xlu1 %920 }
 0x2e0   :  { %v2927_v63 = vpop.permute.xlu1 %61 }
 0x2e4   :  { %v874_v54 = vpop.permute.xlu1 %873 }
 0x2e5   :  { %v890_v50 = vadd.f32 %v874_v54, %v2774_v59  ;;  %v2939_v54 = vpop.permute.xlu0 %150 }
 0x2e7   :  { %v930_v23 = vadd.f32 %v921_v17, %v890_v50 }
 0x2e8   :  { %v2930_v5 = vpop.permute.xlu1 %66 }
 0x2e9   :  { %v938_v13 = vmax.f32 %v930_v23, 0.0  ;;  %v2941_v50 = vpop.permute.xlu0 %154  ;;  %v3447_v23 = vmax.f32 %v2817_v37, 0.0 }
 0x2eb   :  { %v954_v28 = vmul.f32 %v938_v13, %v2734_v24 }
 0x2ec   :  { %v872_v33 = vpop.permute.xlu1 %871 }
 0x2ed   :  { %v889_v32 = vadd.f32 %v872_v33, %v2790_v22  ;;  %977 = vrot.lane.b32.xlu1 %v954_v28, %s2366_s22  ;;  %v2943_v59 = vpop.permute.xlu0 %158  ;;  %v1004_v22 = vmul.f32 %v3447_v23, %v2768_v6 }
 0x2ef   :  { %v929_v31 = vadd.f32 %v917_v62, %v889_v32  ;;  %v3448_v32 = vmax.f32 %v2831_v26, 0.0  ;;  %v1006_v26 = vmul.f32 %v934_v7, %v2839_v10  ;;  %v1008_v7 = vmul.f32 %v936_v9, %v2925_v35 }
 0x2f1   :  { %v937_v1 = vmax.f32 %v929_v31, 0.0  ;;  %v1003_v31 = vmul.f32 %v3448_v32, %v2742_v34 }
 0x2f3   :  { %v953_v2 = vmul.f32 %v937_v1, %v2730_v43 }
 0x2f5   :  { %975 = vrot.lane.b32.xlu0 %v953_v2, %s2366_s22 }
 0x306   :  { %v1030_v33 = vpop.permute.xlu0 %1029 }
 0x307   :  { %v1052_v28 = vadd.f32 %v1030_v33, %v1004_v22 }
 0x308   :  { %v1028_v62 = vpop.permute.xlu1 %1027 }
 0x309   :  { %v2952_v17 = vadd.f32 %v1052_v28, %v2890_v39  ;;  %v1051_v2 = vadd.f32 %v1028_v62, %v1003_v31  ;;  %v3449_v28 = vmax.f32 %v2837_v57, 0.0 }
 0x30b   :  { %v1076_v0 = vmul.f32 %v2952_v17, %v2701_v14  ;;  %v2957_v40 = vadd.f32 %v1051_v2, %v2876_v12  ;;  %v1005_v32 = vmul.f32 %v3449_v28, %v2855_v18 }
 0x30d   :  { %v1075_v37 = vmul.f32 %v2957_v40, %v2694_v16  ;;  %1093 = vrot.lane.b32.xlu1 %v1076_v0, %s2366_s22 }
 0x30f   :  { %1091 = vrot.lane.b32.xlu0 %v1075_v37, %s2366_s22 }
 0x312   :  { %v1034_v23 = vpop.permute.xlu0 %1033 }
 0x313   :  { %v1054_v22 = vadd.f32 %v1034_v23, %v1006_v26 }
 0x315   :  { %v2965_v33 = vadd.f32 %v1054_v22, %v2935_v4  ;;  %v3450_v22 = vmax.f32 %v2879_v15, 0.0 }
 0x316   :  { %v1032_v31 = vpop.permute.xlu0 %1031 }
 0x317   :  { %v1078_v62 = vmul.f32 %v2965_v33, %v2714_v47  ;;  %v1053_v2 = vadd.f32 %v1032_v31, %v1005_v32  ;;  %v1007_v28 = vmul.f32 %v3450_v22, %v2863_v48  ;;  %v1010_v22 = vmul.f32 %v938_v13, %v2930_v5 }
 0x318   :  { %v3451_v13 = vmax.f32 %v2747_v44, 0.0 }
 0x319   :  { %v2973_v0 = vadd.f32 %v1053_v2, %v2910_v55  ;;  %1097 = vrot.lane.b32.xlu1 %v1078_v62, %s2366_s22  ;;  %v1009_v2 = vmul.f32 %v937_v1, %v2927_v63 }
 0x31a   :  { %v1038_v37 = vpop.permute.xlu1 %1037 }
 0x31b   :  { %v1077_v26 = vmul.f32 %v2973_v0, %v2726_v21  ;;  %v1056_v23 = vadd.f32 %v1038_v37, %v1008_v7 }
 0x31d   :  { %v2980_v57 = vadd.f32 %v1056_v23, %v2941_v50  ;;  %1095 = vrot.lane.b32.xlu0 %v1077_v26, %s2366_s22 }
 0x31e   :  { %v1036_v32 = vpop.permute.xlu1 %1035 }
 0x31f   :  { %v1080_v31 = vmul.f32 %v2980_v57, %v2736_v25  ;;  %v1055_v62 = vadd.f32 %v1036_v32, %v1007_v28 }
 0x321   :  { %v2989_v9 = vadd.f32 %v1055_v62, %v2939_v54  ;;  %1101 = vrot.lane.b32.xlu1 %v1080_v31, %s2366_s22 }
 0x322   :  { %v1040_v7 = vpop.permute.xlu1 %1039 }
 0x323   :  { %v1079_v37 = vmul.f32 %v2989_v9, %v2732_v30  ;;  %v1057_v26 = vadd.f32 %v1040_v7, %v1009_v2  ;;  %v2995_v23 = vpop.permute.xlu0 %162  ;;  %v940_v7 = vmul.f32 %v3451_v13, %v2768_v6 }
 0x325   :  { %v2998_v15 = vadd.f32 %v1057_v26, %v2943_v59  ;;  %1099 = vrot.lane.b32.xlu0 %v1079_v37, %s2366_s22 }
 0x327   :  { %v1081_v28 = vmul.f32 %v2998_v15, %v2730_v43  ;;  %v1042_v32 = vpop.permute.xlu0 %1041 }
 0x328   :  { %v1058_v31 = vadd.f32 %v1042_v32, %v1010_v22 }
 0x329   :  { %1103 = vrot.lane.b32.xlu0 %v1081_v28, %s2366_s22  ;;  %v3452_v28 = vmax.f32 %v2751_v52, 0.0  ;;  %v3454_v52 = vmax.f32 %v2766_v11, 0.0 }
 0x32a   :  { %v3006_v1 = vadd.f32 %v1058_v31, %v2995_v23 }
 0x32b   :  { %v3008_v62 = vpop.permute.xlu0 %106  ;;  %v939_v32 = vmul.f32 %v3452_v28, %v2742_v34  ;;  %v942_v28 = vmul.f32 %v3454_v52, %v2839_v10 }
 0x32c   :  { %v1082_v2 = vmul.f32 %v3006_v1, %v2734_v24 }
 0x32e   :  { %1105 = vrot.lane.b32.xlu1 %v1082_v2, %s2366_s22  ;;  %v3453_v2 = vmax.f32 %v2776_v60, 0.0 }
 0x32f   :  { %v966_v37 = vpop.permute.xlu0 %965  ;;  %v103_v26 = vpop.permute.xlu1 %102 }
 0x330   :  { %v988_v29 = vsub.f32 %v940_v7, %v966_v37  ;;  %v941_v27 = vmul.f32 %v3453_v2, %v2855_v18  ;;  %v3456_v2 = vmax.f32 %v2794_v41, 0.0 }
 0x332   :  { %v996_v22 = vadd.f32 %v988_v29, %v3008_v62 }
 0x333   :  { %v968_v31 = vpop.permute.xlu0 %967  ;;  %v964_v8 = vpop.permute.xlu1 %963 }
 0x334   :  { %v1140_v20 = vmul.f32 %v996_v22, %v2701_v14  ;;  %v987_v19 = vsub.f32 %v939_v32, %v964_v8  ;;  %v989_v44 = vsub.f32 %v941_v27, %v968_v31 }
 0x336   :  { %v995_v13 = vadd.f32 %v987_v19, %v103_v26  ;;  %1157 = vrot.lane.b32.xlu1 %v1140_v20, %s2367_s23  ;;  %v3455_v20 = vmax.f32 %v2812_v36, 0.0 }
 0x337   :  { %v970_v7 = vpop.permute.xlu0 %969  ;;  %v3025_v37 = vpop.permute.xlu1 %110 }
 0x338   :  { %v1139_v29 = vmul.f32 %v995_v13, %v2694_v16  ;;  %v997_v14 = vadd.f32 %v989_v44, %v3025_v37  ;;  %v990_v38 = vsub.f32 %v942_v28, %v970_v7  ;;  %v943_v27 = vmul.f32 %v3455_v20, %v2863_v48 }
 0x339   :  { %v944_v44 = vmul.f32 %v3456_v2, %v2925_v35 }
 0x33a   :  { %1155 = vrot.lane.b32.xlu0 %v1139_v29, %s2367_s23  ;;  %v1141_v19 = vmul.f32 %v997_v14, %v2726_v21 }
 0x33b   :  { %v972_v60 = vpop.permute.xlu0 %971  ;;  %v115_v8 = vpop.permute.xlu1 %114 }
 0x33c   :  { %v998_v32 = vadd.f32 %v990_v38, %v115_v8  ;;  %v991_v31 = vsub.f32 %v943_v27, %v972_v60  ;;  %v3457_v60 = vmax.f32 %v2792_v61, 0.0 }
 0x33e   :  { %v1142_v16 = vmul.f32 %v998_v32, %v2714_v47  ;;  %1159 = vrot.lane.b32.xlu0 %v1141_v19, %s2367_s23  ;;  %v946_v19 = vmul.f32 %v3457_v60, %v2930_v5 }
 0x33f   :  { %v3039_v11 = vpop.permute.xlu1 %118 }
 0x340   :  { %v999_v7 = vadd.f32 %v991_v31, %v3039_v11  ;;  %v974_v29 = vpop.permute.xlu0 %973  ;;  %1161 = vrot.lane.b32.xlu1 %v1142_v16, %s2367_s23 }
 0x341   :  { %v992_v21 = vsub.f32 %v944_v44, %v974_v29 }
 0x342   :  { %v1143_v36 = vmul.f32 %v999_v7, %v2732_v30 }
 0x343   :  { %v123_v38 = vpop.permute.xlu1 %122 }
 0x344   :  { %v1000_v52 = vadd.f32 %v992_v21, %v123_v38  ;;  %1163 = vrot.lane.b32.xlu0 %v1143_v36, %s2367_s23  ;;  %v1068_v21 = vmul.f32 %v996_v22, %v2768_v6 }
 0x346   :  { %v1144_v47 = vmul.f32 %v1000_v52, %v2736_v25  ;;  %v3458_v25 = vmax.f32 %v2809_v42, 0.0 }
 0x347   :  { %v3050_v28 = vpop.permute.xlu1 %126 }
 0x348   :  { %1165 = vrot.lane.b32.xlu0 %v1144_v47, %s2367_s23  ;;  %v945_v16 = vmul.f32 %v3458_v25, %v2927_v63 }
 0x34b   :  { %v3052_v41 = vpop.permute.xlu1 %130 }
 0x35f   :  { %v978_v20 = vpop.permute.xlu1 %977 }
 0x360   :  { %v994_v27 = vsub.f32 %v946_v19, %v978_v20 }
 0x362   :  { %v3058_v30 = vadd.f32 %v994_v27, %v3052_v41 }
 0x364   :  { %v1146_v31 = vmul.f32 %v3058_v30, %v2734_v24  ;;  %v1067_v24 = vmul.f32 %v995_v13, %v2742_v34  ;;  %v1070_v13 = vmul.f32 %v998_v32, %v2839_v10 }
 0x366   :  { %1169 = vrot.lane.b32.xlu0 %v1146_v31, %s2367_s23 }
 0x367   :  { %v976_v2 = vpop.permute.xlu0 %975 }
 0x368   :  { %v993_v44 = vsub.f32 %v945_v16, %v976_v2 }
 0x36a   :  { %v1001_v29 = vadd.f32 %v993_v44, %v3050_v28 }
 0x36c   :  { %v1145_v61 = vmul.f32 %v1001_v29, %v2730_v43 }
 0x36e   :  { %1167 = vrot.lane.b32.xlu0 %v1145_v61, %s2367_s23  ;;  %v1069_v61 = vmul.f32 %v997_v14, %v2855_v18 }
 0x37f   :  { %v1094_v36 = vpop.permute.xlu1 %1093 }
 0x380   :  { %v1116_v47 = vsub.f32 %v1068_v21, %v1094_v36 }
 0x381   :  { %v1092_v60 = vpop.permute.xlu0 %1091 }
 0x382   :  { %v1124_v19 = vadd.f32 %v1116_v47, %v3008_v62  ;;  %v1115_v20 = vsub.f32 %v1067_v24, %v1092_v60  ;;  %v1072_v60 = vmul.f32 %v1000_v52, %v2925_v35 }
 0x384   :  { %v1123_v42 = vadd.f32 %v1115_v20, %v103_v26  ;;  %v2107_v27 = vadd.f32 -0.01, %v1124_v19  ;;  %vm1212_vm2 = vcmp.lt.f32.partialorder %v1124_v19, -0.01  ;;  %v1220_v31 = vadd.f32 0.01, %v1124_v19 }
 0x385   :  { %vm1196_vm4 = vcmp.gt.f32.partialorder %v1124_v19, 0.01 }
 0x386   :  { %vm1211_vm3 = vcmp.lt.f32.partialorder %v1123_v42, -0.01  ;;  %v1228_v25 = vsel %vm1212_vm2, %v1220_v31, 0.0  ;;  %v1219_v43 = vadd.f32 0.01, %v1123_v42 }
 0x387   :  { %v3072_v16 = vsel %vm1196_vm4, %v2107_v27, %v1228_v25  ;;  %v2106_v2 = vadd.f32 -0.01, %v1123_v42  ;;  %vm1195_vm5 = vcmp.gt.f32.partialorder %v1123_v42, 0.01  ;;  %v1071_v25 = vmul.f32 %v999_v7, %v2863_v48 }
 0x388   :  { %1405 = vrot.lane.b32.xlu1 %v3072_v16, %s2367_s23  ;;  %v1227_v22 = vsel %vm1211_vm3, %v1219_v43, 0.0 }
 0x389   :  { %v3077_v62 = vsel %vm1195_vm5, %v2106_v2, %v1227_v22 }
 0x38b   :  { %v1098_v44 = vpop.permute.xlu1 %1097 }
 0x38c   :  { %v1118_v26 = vsub.f32 %v1070_v13, %v1098_v44  ;;  %1403 = vrot.lane.b32.xlu1 %v3077_v62, %s2367_s23  ;;  %v1073_v44 = vmul.f32 %v1001_v29, %v2927_v63 }
 0x38e   :  { %v1126_v47 = vadd.f32 %v1118_v26, %v115_v8 }
 0x38f   :  { %v1096_v21 = vpop.permute.xlu0 %1095 }
 0x390   :  { %v1117_v36 = vsub.f32 %v1069_v61, %v1096_v21  ;;  %v1222_v27 = vadd.f32 0.01, %v1126_v47  ;;  %vm1214_vm7 = vcmp.lt.f32.partialorder %v1126_v47, -0.01  ;;  %v2109_v8 = vadd.f32 -0.01, %v1126_v47 }
 0x391   :  { %vm1198_vm10 = vcmp.gt.f32.partialorder %v1126_v47, 0.01 }
 0x392   :  { %v1125_v24 = vadd.f32 %v1117_v36, %v3025_v37  ;;  %v1230_v37 = vsel %vm1214_vm7, %v1222_v27, 0.0 }
 0x393   :  { %v1102_v19 = vpop.permute.xlu1 %1101  ;;  %v3091_v26 = vsel %vm1198_vm10, %v2109_v8, %v1230_v37 }
 0x394   :  { %v1120_v20 = vsub.f32 %v1072_v60, %v1102_v19  ;;  %v2108_v32 = vadd.f32 -0.01, %v1125_v24  ;;  %vm1213_vm6 = vcmp.lt.f32.partialorder %v1125_v24, -0.01  ;;  %v1221_v42 = vadd.f32 0.01, %v1125_v24 }
 0x395   :  { %vm1197_vm8 = vcmp.gt.f32.partialorder %v1125_v24, 0.01 }
 0x396   :  { %v1128_v31 = vadd.f32 %v1120_v20, %v123_v38  ;;  %v1229_v14 = vsel %vm1213_vm6, %v1221_v42, 0.0 }
 0x397   :  { %v1100_v43 = vpop.permute.xlu0 %1099  ;;  %v3085_v22 = vsel %vm1197_vm8, %v2108_v32, %v1229_v14  ;;  %v1132_v14 = vmul.f32 %v2952_v17, %v2768_v6  ;;  %v1133_v17 = vmul.f32 %v2973_v0, %v2855_v18 }
 0x398   :  { %v1119_v2 = vsub.f32 %v1071_v25, %v1100_v43  ;;  %1407 = vrot.lane.b32.xlu1 %v3085_v22, %s2367_s23  ;;  %v1224_v52 = vadd.f32 0.01, %v1128_v31  ;;  %vm1216_vm9 = vcmp.lt.f32.partialorder %v1128_v31, -0.01  ;;  %v2111_v61 = vadd.f32 -0.01, %v1128_v31 }
 0x399   :  { %vm1200_vm12 = vcmp.gt.f32.partialorder %v1128_v31, 0.01 }
 0x39a   :  { %v1127_v13 = vadd.f32 %v1119_v2, %v3039_v11  ;;  %v1232_v36 = vsel %vm1216_vm9, %v1224_v52, 0.0  ;;  %v1074_v11 = vmul.f32 %v3058_v30, %v2930_v5 }
 0x39b   :  { %v1104_v38 = vpop.permute.xlu0 %1103  ;;  %v3098_v47 = vsel %vm1200_vm12, %v2111_v61, %v1232_v36 }
 0x39c   :  { %v1121_v7 = vsub.f32 %v1073_v44, %v1104_v38  ;;  %v2110_v21 = vadd.f32 -0.01, %v1127_v13  ;;  %1409 = vrot.lane.b32.xlu1 %v3091_v26, %s2367_s23  ;;  %vm1215_vm11 = vcmp.lt.f32.partialorder %v1127_v13, -0.01  ;;  %v1223_v24 = vadd.f32 0.01, %v1127_v13 }
 0x39d   :  { %vm1199_vm13 = vcmp.gt.f32.partialorder %v1127_v13, 0.01  ;;  %v1131_v13 = vmul.f32 %v2957_v40, %v2742_v34 }
 0x39e   :  { %v1129_v60 = vadd.f32 %v1121_v7, %v3050_v28  ;;  %v1231_v29 = vsel %vm1215_vm11, %v1223_v24, 0.0 }
 0x39f   :  { %v3100_v20 = vsel %vm1199_vm13, %v2110_v21, %v1231_v29 }
 0x3a0   :  { %v1106_v19 = vpop.permute.xlu1 %1105  ;;  %v2112_v32 = vadd.f32 -0.01, %v1129_v60  ;;  %vm1217_vm14 = vcmp.lt.f32.partialorder %v1129_v60, -0.01  ;;  %1413 = vrot.lane.b32.xlu1 %v3098_v47, %s2367_s23  ;;  %1411 = vrot.lane.b32.xlu0 %v3100_v20, %s2367_s23  ;;  %v1225_v28 = vadd.f32 0.01, %v1129_v60 }
 0x3a1   :  { %v1122_v42 = vsub.f32 %v1074_v11, %v1106_v19  ;;  %vm1201_vm15 = vcmp.gt.f32.partialorder %v1129_v60, 0.01 }
 0x3a2   :  { %v1233_v30 = vsel %vm1217_vm14, %v1225_v28, 0.0 }
 0x3a3   :  { %v1130_v27 = vadd.f32 %v1122_v42, %v3052_v41  ;;  %v3107_v31 = vsel %vm1201_vm15, %v2112_v32, %v1233_v30  ;;  %v1135_v32 = vmul.f32 %v2989_v9, %v2863_v48  ;;  %v1136_v48 = vmul.f32 %v2980_v57, %v2925_v35 }
 0x3a4   :  { %1415 = vrot.lane.b32.xlu0 %v3107_v31, %s2367_s23 }
 0x3a5   :  { %v2113_v25 = vadd.f32 -0.01, %v1130_v27  ;;  %vm1218_vm1 = vcmp.lt.f32.partialorder %v1130_v27, -0.01  ;;  %v1226_v43 = vadd.f32 0.01, %v1130_v27 }
 0x3a6   :  { %vm1202_vm2 = vcmp.gt.f32.partialorder %v1130_v27, 0.01 }
 0x3a7   :  { %v1234_v8 = vsel %vm1218_vm1, %v1226_v43, 0.0 }
 0x3a8   :  { %v1158_v2 = vpop.permute.xlu1 %1157  ;;  %v3113_v52 = vsel %vm1202_vm2, %v2113_v25, %v1234_v8 }
 0x3a9   :  { %v1180_v37 = vadd.f32 %v1158_v2, %v1132_v14  ;;  %1417 = vrot.lane.b32.xlu1 %v3113_v52, %s2367_s23 }
 0x3ab   :  { %v1188_v41 = vadd.f32 %v1180_v37, %v2890_v39  ;;  %v1134_v39 = vmul.f32 %v2965_v33, %v2839_v10 }
 0x3ac   :  { %v1156_v44 = vpop.permute.xlu0 %1155 }
 0x3ad   :  { %v1179_v38 = vadd.f32 %v1156_v44, %v1131_v13  ;;  %v2115_v7 = vadd.f32 -0.01, %v1188_v41  ;;  %vm1260_vm3 = vcmp.lt.f32.partialorder %v1188_v41, -0.01  ;;  %v1268_v61 = vadd.f32 0.01, %v1188_v41 }
 0x3ae   :  { %vm1244_vm4 = vcmp.gt.f32.partialorder %v1188_v41, 0.01 }
 0x3af   :  { %v1187_v6 = vadd.f32 %v1179_v38, %v2876_v12  ;;  %v1276_v36 = vsel %vm1260_vm3, %v1268_v61, 0.0 }
 0x3b0   :  { %v1160_v21 = vpop.permute.xlu0 %1159  ;;  %v3123_v60 = vsel %vm1244_vm4, %v2115_v7, %v1276_v36  ;;  %v1138_v7 = vmul.f32 %v3006_v1, %v2930_v5  ;;  %v1137_v36 = vmul.f32 %v2998_v15, %v2927_v63  ;;  %vm1523_vm4 = vcmask 130048  }
 0x3b1   :  { %v1181_v24 = vadd.f32 %v1160_v21, %v1133_v17  ;;  %v2114_v34 = vadd.f32 -0.01, %v1187_v6  ;;  %1365 = vrot.lane.b32.xlu1 %v3123_v60, %s2366_s22  ;;  %vm1259_vm5 = vcmp.lt.f32.partialorder %v1187_v6, -0.01  ;;  %v1267_v11 = vadd.f32 0.01, %v1187_v6 }
 0x3b2   :  { %v1162_v40 = vpop.permute.xlu1 %1161  ;;  %vm1243_vm6 = vcmp.gt.f32.partialorder %v1187_v6, 0.01 }
 0x3b3   :  { %v1189_v12 = vadd.f32 %v1181_v24, %v2910_v55  ;;  %v1182_v29 = vadd.f32 %v1162_v40, %v1134_v39  ;;  %v1275_v18 = vsel %vm1259_vm5, %v1267_v11, 0.0  ;;  %vm1873_vm5 = vcmask 523264  }
 0x3b4   :  { %v3131_v19 = vsel %vm1243_vm6, %v2114_v34, %v1275_v18 }
 0x3b5   :  { %v1190_v0 = vadd.f32 %v1182_v29, %v2935_v4  ;;  %v2116_v10 = vadd.f32 -0.01, %v1189_v12  ;;  %1363 = vrot.lane.b32.xlu0 %v3131_v19, %s2366_s22  ;;  %vm1261_vm7 = vcmp.lt.f32.partialorder %v1189_v12, -0.01  ;;  %v1269_v42 = vadd.f32 0.01, %v1189_v12 }
 0x3b6   :  { %v1164_v33 = vpop.permute.xlu0 %1163  ;;  %vm1245_vm9 = vcmp.gt.f32.partialorder %v1189_v12, 0.01 }
 0x3b7   :  { %v1183_v28 = vadd.f32 %v1164_v33, %v1135_v32  ;;  %v2117_v27 = vadd.f32 -0.01, %v1190_v0  ;;  %vm1262_vm8 = vcmp.lt.f32.partialorder %v1190_v0, -0.01  ;;  %v1277_v55 = vsel %vm1261_vm7, %v1269_v42, 0.0 }
 0x3b8   :  { %v1270_v30 = vadd.f32 0.01, %v1190_v0  ;;  %v3138_v25 = vsel %vm1245_vm9, %v2116_v10, %v1277_v55  ;;  %vm1246_vm10 = vcmp.gt.f32.partialorder %v1190_v0, 0.01 }
 0x3b9   :  { %v1191_v4 = vadd.f32 %v1183_v28, %v2939_v54  ;;  %1367 = vrot.lane.b32.xlu0 %v3138_v25, %s2366_s22 }
 0x3ba   :  { %v1166_v9 = vpop.permute.xlu0 %1165  ;;  %v1278_v43 = vsel %vm1262_vm8, %v1270_v30, 0.0 }
 0x3bb   :  { %v1184_v14 = vadd.f32 %v1166_v9, %v1136_v48  ;;  %v3144_v2 = vsel %vm1246_vm10, %v2117_v27, %v1278_v43  ;;  %v2118_v8 = vadd.f32 -0.01, %v1191_v4  ;;  %vm1263_vm11 = vcmp.lt.f32.partialorder %v1191_v4, -0.01 }
 0x3bc   :  { %1369 = vrot.lane.b32.xlu1 %v3144_v2, %s2366_s22  ;;  %v1271_v54 = vadd.f32 0.01, %v1191_v4  ;;  %vm1247_vm12 = vcmp.gt.f32.partialorder %v1191_v4, 0.01  ;;  %v1299_v4 = vmul.f32 %v3131_v19, %v2644_v46  ;;  %v1301_v43 = vmul.f32 %v3138_v25, %v2651_v49 }
 0x3bd   :  { %v1192_v37 = vadd.f32 %v1184_v14, %v2941_v50  ;;  %v1300_v14 = vmul.f32 %v2641_v3, %v3123_v60  ;;  %v1302_v19 = vmul.f32 %v2648_v45, %v3144_v2 }
 0x3be   :  { %v1279_v41 = vsel %vm1263_vm11, %v1271_v54, 0.0 }
 0x3bf   :  { %v3149_v35 = vsel %vm1247_vm12, %v2118_v8, %v1279_v41  ;;  %v2119_v57 = vadd.f32 -0.01, %v1192_v37  ;;  %vm1264_vm13 = vcmp.lt.f32.partialorder %v1192_v37, -0.01  ;;  %v1272_v13 = vadd.f32 0.01, %v1192_v37 }
 0x3c0   :  { %1371 = vrot.lane.b32.xlu0 %v3149_v35, %s2366_s22  ;;  %vm1248_vm14 = vcmp.gt.f32.partialorder %v1192_v37, 0.01  ;;  %v1303_v8 = vmul.f32 %v3149_v35, %v2658_v53  ;;  %v25_v35 = vld [vmem:[%s3398_s2 + $0x50] sm:$0xff] }
 0x3c1   :  { %v1280_v44 = vsel %vm1264_vm13, %v1272_v13, 0.0  ;;  %2208 = vmatprep.subr.mxu1 %v25_v35 }
 0x3c2   :  { %v1288_v38 = vsel %vm1248_vm14, %v2119_v57, %v1280_v44  ;;  %2209 = vmatpush3.msra.mxu1 %v25_v35 }
 0x3c3   :  { %1373 = vrot.lane.b32.xlu1 %v1288_v38, %s2366_s22  ;;  %v1304_v54 = vmul.f32 %v2655_v51, %v1288_v38 }
 0x3d8   :  { %v1170_v61 = vpop.permute.xlu0 %1169 }
 0x3d9   :  { %v1186_v50 = vadd.f32 %v1170_v61, %v1138_v7  ;;  %v24_v7 = vld [vmem:[%s3398_s2 + $0x48] sm:$0xff] }
 0x3da   :  { %2210 = vmatprep.subr.mxu1 %v24_v7 }
 0x3db   :  { %v1194_v6 = vadd.f32 %v1186_v50, %v2995_v23  ;;  %2211 = vmatpush3.msra.mxu1 %v24_v7  ;;  %v1292_v7 = vmul.f32 %v2641_v3, %v3072_v16 }
 0x3dd   :  { %v2121_v17 = vadd.f32 -0.01, %v1194_v6  ;;  %vm1266_vm15 = vcmp.lt.f32.partialorder %v1194_v6, -0.01  ;;  %v1274_v21 = vadd.f32 0.01, %v1194_v6 }
 0x3de   :  { %vm1250_vm1 = vcmp.gt.f32.partialorder %v1194_v6, 0.01 }
 0x3df   :  { %v1282_v39 = vsel %vm1266_vm15, %v1274_v21, 0.0 }
 0x3e0   :  { %v1168_v24 = vpop.permute.xlu0 %1167  ;;  %v1290_v40 = vsel %vm1250_vm1, %v2121_v17, %v1282_v39 }
 0x3e1   :  { %v1185_v34 = vadd.f32 %v1168_v24, %v1137_v36  ;;  %1377 = vrot.lane.b32.xlu1 %v1290_v40, %s2366_s22  ;;  %v1306_v25 = vmul.f32 %v2661_v56, %v1290_v40 }
 0x3e3   :  { %v1193_v11 = vadd.f32 %v1185_v34, %v2943_v59 }
 0x3e5   :  { %v2120_v5 = vadd.f32 -0.01, %v1193_v11  ;;  %vm1265_vm2 = vcmp.lt.f32.partialorder %v1193_v11, -0.01  ;;  %v1273_v1 = vadd.f32 0.01, %v1193_v11 }
 0x3e6   :  { %vm1249_vm3 = vcmp.gt.f32.partialorder %v1193_v11, 0.01 }
 0x3e7   :  { %v1281_v23 = vsel %vm1265_vm2, %v1273_v1, 0.0 }
 0x3e8   :  { %v1289_v12 = vsel %vm1249_vm3, %v2120_v5, %v1281_v23 }
 0x3e9   :  { %1375 = vrot.lane.b32.xlu0 %v1289_v12, %s2366_s22  ;;  %v1305_v60 = vmul.f32 %v1289_v12, %v2665_v58 }
 0x3fa   :  { %v1406_v29 = vpop.permute.xlu1 %1405 }
 0x3fb   :  { %v1428_v63 = vmul.f32 %v2641_v3, %v1406_v29 }
 0x3fd   :  { %1445 = vrot.lane.b32.xlu1 %v1428_v63, %s2366_s22 }
 0x3fe   :  { %v1404_v15 = vpop.permute.xlu1 %1403 }
 0x3ff   :  { %v1427_v18 = vmul.f32 %v1404_v15, %v2644_v46 }
 0x401   :  { %1443 = vrot.lane.b32.xlu0 %v1427_v18, %s2366_s22 }
 0x40a   :  { %v1408_v0 = vpop.permute.xlu1 %1407 }
 0x40b   :  { %v1429_v59 = vmul.f32 %v1408_v0, %v2651_v49 }
 0x40d   :  { %1447 = vrot.lane.b32.xlu0 %v1429_v59, %s2366_s22 }
 0x40e   :  { %v1410_v32 = vpop.permute.xlu1 %1409 }
 0x40f   :  { %v1430_v10 = vmul.f32 %v2648_v45, %v1410_v32 }
 0x411   :  { %1449 = vrot.lane.b32.xlu1 %v1430_v10, %s2366_s22 }
 0x412   :  { %v1414_v33 = vpop.permute.xlu1 %1413  ;;  %v1412_v42 = vpop.permute.xlu0 %1411 }
 0x413   :  { %v1432_v28 = vmul.f32 %v2655_v51, %v1414_v33  ;;  %v1431_v27 = vmul.f32 %v1412_v42, %v2658_v53 }
 0x415   :  { %1453 = vrot.lane.b32.xlu1 %v1432_v28, %s2366_s22  ;;  %1451 = vrot.lane.b32.xlu0 %v1431_v27, %s2366_s22  ;;  %v2370_v28 = vmov 11  }
 0x416   :  { %v1416_v55 = vpop.permute.xlu0 %1415  ;;  %2310 = vset.pattern.permute.xlu1 %v2370_v28  ;;  %2309 = vset.pattern.permute.xlu0 %v2370_v28 }
 0x417   :  { %v1433_v30 = vmul.f32 %v1416_v55, %v2665_v58 }
 0x419   :  { %1455 = vrot.lane.b32.xlu0 %v1433_v30, %s2366_s22 }
 0x41b   :  { %v1418_v48 = vpop.permute.xlu1 %1417 }
 0x41c   :  { %v1434_v9 = vmul.f32 %v2661_v56, %v1418_v48 }
 0x41d   :  { %1315 = vrot.lane.b32.xlu0 %v1299_v4, %s2366_s22 }
 0x41e   :  { %1457 = vrot.lane.b32.xlu1 %v1434_v9, %s2366_s22 }
 0x421   :  { %1319 = vrot.lane.b32.xlu0 %v1301_v43, %s2366_s22 }
 0x422   :  { %1317 = vrot.lane.b32.xlu1 %v1300_v14, %s2366_s22  ;;  %v3459_v14 = vld [vmem:[#allocation13_spill] sm:$0xff] }
 0x423   :  { %v1366_v2 = vpop.permute.xlu1 %1365 }
 0x424   :  { %v1388_v61 = vmul.f32 %v2641_v3, %v1366_v2 }
 0x425   :  { %1321 = vrot.lane.b32.xlu0 %v1302_v19, %s2366_s22 }
 0x427   :  { %v1364_v37 = vpop.permute.xlu0 %1363 }
 0x428   :  { %v1387_v21 = vmul.f32 %v1364_v37, %v2644_v46 }
 0x429   :  { %1323 = vrot.lane.b32.xlu0 %v1303_v8, %s2366_s22  ;;  %v3460_v8 = vld [vmem:[#allocation9_spill] sm:$0xff] }
 0x42b   :  { %v1368_v57 = vpop.permute.xlu0 %1367 }
 0x42c   :  { %v1389_v1 = vmul.f32 %v1368_v57, %v2651_v49 }
 0x42d   :  { %1325 = vrot.lane.b32.xlu0 %v1304_v54, %s2366_s22  ;;  %v3461_v54 = vld [vmem:[#allocation14_spill] sm:$0xff] }
 0x42e   :  { %v1370_v41 = vpop.permute.xlu1 %1369 }
 0x42f   :  { %v1390_v40 = vmul.f32 %v2648_v45, %v1370_v41 }
 0x431   :  { %1327 = vrot.lane.b32.xlu0 %v1305_v60, %s2366_s22  ;;  %v2371_v60 = vmov 12  }
 0x432   :  { %v1372_v44 = vpop.permute.xlu0 %1371 }
 0x433   :  { %v1391_v15 = vmul.f32 %v1372_v44, %v2658_v53 }
 0x435   :  { %1329 = vrot.lane.b32.xlu0 %v1306_v25, %s2366_s22  ;;  %v1374_v13 = vpop.permute.xlu1 %1373  ;;  %v3462_v25 = vld [vmem:[#allocation11_spill] sm:$0xff] }
 0x436   :  { %v1392_v33 = vmul.f32 %v2655_v51, %v1374_v13 }
 0x453   :  { %v1378_v38 = vpop.permute.xlu1 %1377 }
 0x454   :  { %v1394_v4 = vmul.f32 %v2661_v56, %v1378_v38 }
 0x45b   :  { %v1376_v50 = vpop.permute.xlu0 %1375 }
 0x45c   :  { %v1393_v18 = vmul.f32 %v1376_v50, %v2665_v58 }
 0x46f   :  { %v1446_v6 = vpop.permute.xlu1 %1445 }
 0x470   :  { %v1468_v17 = vadd.f32 %v1446_v6, %v1388_v61 }
 0x472   :  { %v1476_v36 = vadd.f32 %v1468_v17, %v1366_v2  ;;  %v3463_v2 = vld [vmem:[#allocation10_spill] sm:$0xff] }
 0x473   :  { %v1444_v24 = vpop.permute.xlu0 %1443 }
 0x474   :  { %v1467_v39 = vadd.f32 %v1444_v24, %v1387_v21  ;;  %1493 = vrot.lane.b32.xlu1 %v1476_v36, %s2367_s23 }
 0x476   :  { %v1475_v34 = vadd.f32 %v1467_v39, %v1364_v37  ;;  %v3464_v37 = vld [vmem:[#allocation8_spill] sm:$0xff] }
 0x478   :  { %1491 = vrot.lane.b32.xlu1 %v1475_v34, %s2367_s23 }
 0x47f   :  { %v1448_v11 = vpop.permute.xlu0 %1447 }
 0x480   :  { %v1469_v12 = vadd.f32 %v1448_v11, %v1389_v1  ;;  %v1295_v1 = vmul.f32 %v3100_v20, %v2658_v53 }
 0x482   :  { %v1477_v0 = vadd.f32 %v1469_v12, %v1368_v57  ;;  %v3238_v57 = vld [vmem:[%s3398_s2 + $0x8] sm:$0xff] }
 0x483   :  { %v1450_v5 = vpop.permute.xlu1 %1449 }
 0x484   :  { %v1470_v23 = vadd.f32 %v1450_v5, %v1390_v40  ;;  %v1293_v40 = vmul.f32 %v3085_v22, %v2651_v49 }
 0x486   :  { %v1478_v29 = vadd.f32 %v1470_v23, %v1370_v41  ;;  %v3465_v41 = vld [vmem:[#allocation12_spill] sm:$0xff] }
 0x487   :  { %v1452_v63 = vpop.permute.xlu0 %1451  ;;  %v1454_v32 = vpop.permute.xlu1 %1453 }
 0x488   :  { %1497 = vrot.lane.b32.xlu1 %v1478_v29, %s2367_s23  ;;  %v1471_v59 = vadd.f32 %v1452_v63, %v1391_v15  ;;  %v1472_v27 = vadd.f32 %v1454_v32, %v1392_v33 }
 0x48a   :  { %v1479_v55 = vadd.f32 %v1471_v59, %v1372_v44  ;;  %v1480_v9 = vadd.f32 %v1472_v27, %v1374_v13  ;;  %v1291_v44 = vmul.f32 %v3077_v62, %v2644_v46 }
 0x48b   :  { %v1456_v10 = vpop.permute.xlu0 %1455 }
 0x48c   :  { %v1473_v42 = vadd.f32 %v1456_v10, %v1393_v18  ;;  %1495 = vrot.lane.b32.xlu1 %v1477_v0, %s2367_s23  ;;  %v1296_v18 = vmul.f32 %v2655_v51, %v3098_v47  ;;  %v1298_v51 = vmul.f32 %v2661_v56, %v3113_v52 }
 0x48e   :  { %v1481_v30 = vadd.f32 %v1473_v42, %v1376_v50 }
 0x48f   :  { %v1316_v13 = vpop.permute.xlu0 %1315 }
 0x490   :  { %v1458_v48 = vpop.permute.xlu1 %1457  ;;  %1499 = vrot.lane.b32.xlu1 %v1479_v55, %s2367_s23  ;;  %1503 = vrot.lane.b32.xlu0 %v1481_v30, %s2367_s23  ;;  %v1339_v61 = vsub.f32 %v1291_v44, %v1316_v13 }
 0x491   :  { %v1474_v43 = vadd.f32 %v1458_v48, %v1394_v4 }
 0x492   :  { %v1347_v17 = vadd.f32 %v1339_v61, %v3077_v62  ;;  %v1294_v62 = vmul.f32 %v2648_v45, %v3091_v26  ;;  %v1297_v45 = vmul.f32 %v3107_v31, %v2665_v58 }
 0x493   :  { %v1482_v19 = vadd.f32 %v1474_v43, %v1378_v38  ;;  %v1320_v38 = vpop.permute.xlu0 %1319 }
 0x494   :  { %1501 = vrot.lane.b32.xlu1 %v1480_v9, %s2367_s23  ;;  %1762 = vperm.xlu0 %2309, %v3459_v14   ;;  %v1318_v35 = vpop.permute.xlu1 %1317  ;;  %v1341_v11 = vsub.f32 %v1293_v40, %v1320_v38  ;;  %v3300_v9 = vld [vmem:[%s3398_s2] sm:$0xff] }
 0x495   :  { %v1340_v50 = vsub.f32 %v1292_v7, %v1318_v35 }
 0x496   :  { %v1349_v12 = vadd.f32 %v1341_v11, %v3085_v22 }
 0x497   :  { %v1322_v21 = vpop.permute.xlu0 %1321  ;;  %v1348_v36 = vadd.f32 %v1340_v50, %v3072_v16 }
 0x498   :  { %1505 = vrot.lane.b32.xlu1 %v1482_v19, %s2367_s23  ;;  %1746 = vperm.xlu0 %2309, %v3460_v8   ;;  %v1342_v5 = vsub.f32 %v1294_v62, %v1322_v21 }
 0x49a   :  { %v1350_v63 = vadd.f32 %v1342_v5, %v3091_v26 }
 0x49b   :  { %v1324_v46 = vpop.permute.xlu0 %1323 }
 0x49c   :  { %1766 = vperm.xlu1 %2310, %v3461_v54   ;;  %2314 = vset.pattern.permute.xlu0 %v2371_v60  ;;  %v1343_v29 = vsub.f32 %v1295_v1, %v1324_v46 }
 0x49d   :  { %1806 = vperm.xlu0 %2314, %v3461_v54  }
 0x49e   :  { %v1351_v53 = vadd.f32 %v1343_v29, %v3100_v20 }
 0x49f   :  { %v1326_v3 = vpop.permute.xlu0 %1325 }
 0x4a0   :  { %2311 = vset.pattern.permute.xlu1 %v2371_v60  ;;  %v1344_v59 = vsub.f32 %v1296_v18, %v1326_v3 }
 0x4a1   :  { %1802 = vperm.xlu1 %2311, %v3459_v14   ;;  %1794 = vperm.xlu0 %2314, %v3462_v25  }
 0x4a2   :  { %v1352_v58 = vadd.f32 %v1344_v59, %v3098_v47  ;;  %v2327_v47 = vld [vmem:[%s3397_s1 + $0x20] sm:$0xff]  }
 0x4a3   :  { %v1328_v23 = vpop.permute.xlu0 %1327  ;;  %2232 = vmatprep.mubr.msk.bf16.mxu0 %vm1873_vm5, %v2327_v47 }
 0x4a4   :  { %v1345_v26 = vsub.f32 %v1297_v45, %v1328_v23 }
 0x4a5   :  { %2312 = vset.pattern.permute.xlu1 %v2370_v28  ;;  %1790 = vperm.xlu0 %2314, %v3463_v2  }
 0x4a6   :  { %1754 = vperm.xlu1 %2312, %v3462_v25  }
 0x4a7   :  { %v1330_v22 = vpop.permute.xlu0 %1329 }
 0x4a8   :  { %v1346_v33 = vsub.f32 %v1298_v51, %v1330_v22 }
 0x4a9   :  { %1778 = vperm.xlu0 %2314, %v3464_v37  }
 0x4aa   :  { %1758 = vperm.xlu1 %2312, %v3465_v41   ;;  %v1354_v30 = vadd.f32 %v1346_v33, %v3113_v52  ;;  %v3293_v52 = vld [vmem:[%s3398_s2 + $0x10] sm:$0xff] }
 0x4ae   :  { %2313 = vset.pattern.permute.xlu1 %v2371_v60 }
 0x4af   :  { %1798 = vperm.xlu1 %2313, %v3465_v41  }
 0x4b3   :  { %2315 = vset.pattern.permute.xlu1 %v2370_v28 }
 0x4b4   :  { %1750 = vperm.xlu1 %2315, %v3463_v2  }
 0x4b8   :  { %2316 = vset.pattern.permute.xlu1 %v2371_v60 }
 0x4b9   :  { %1786 = vperm.xlu1 %2316, %v3460_v8  }
 0x4bd   :  { %2317 = vset.pattern.permute.xlu1 %v2370_v28  ;;  %v1353_v28 = vadd.f32 %v1345_v26, %v3107_v31  ;;  %v2372_v31 = vmov 13  }
 0x4be   :  { %1738 = vperm.xlu1 %2317, %v3464_v37   ;;  %2319 = vset.pattern.permute.xlu0 %v2372_v31 }
 0x4bf   :  { %1846 = vperm.xlu0 %2319, %v3459_v14  }
 0x4c2   :  { %1742 = vperm.xlu1 %2317, %v3238_v57  }
 0x4c3   :  { %1842 = vperm.xlu0 %2319, %v3465_v41  }
 0x4c6   :  { %2318 = vset.pattern.permute.xlu1 %v2371_v60 }
 0x4c7   :  { %1782 = vperm.xlu1 %2318, %v3238_v57   ;;  %1834 = vperm.xlu0 %2319, %v3463_v2  }
 0x4cb   :  { %2320 = vset.pattern.permute.xlu1 %v2372_v31  ;;  %1826 = vperm.xlu0 %2319, %v3238_v57  }
 0x4cc   :  { %1850 = vperm.xlu1 %2320, %v3461_v54  }
 0x4d0   :  { %1838 = vperm.xlu1 %2320, %v3462_v25  }
 0x4d4   :  { %1830 = vperm.xlu1 %2320, %v3293_v52  }
 0x4d8   :  { %1822 = vperm.xlu1 %2320, %v3300_v9  }
 0x4e6   :  { %v1494_v6 = vpop.permute.xlu1 %1493 }
 0x4e7   :  { %v1516_v34 = vsel %vm189_vm0, %v1348_v36, %v1494_v6 }
 0x4ea   :  { %v1492_v24 = vpop.permute.xlu1 %1491 }
 0x4eb   :  { %v1515_v39 = vsel %vm189_vm0, %v1347_v17, %v1492_v24 }
 0x4ec   :  { %2212 = vmatprep.mubr.msk.f32.mxu1 %vm1523_vm4, %v1515_v39 }
 0x4ed   :  { %2213 = vmatmul.mubr.msk.f32.vlgmr.msra.gmra.mxu1 %vm1523_vm4, %v1516_v34 }
 0x4fa   :  { %v1498_v16 = vpop.permute.xlu1 %1497 }
 0x4fb   :  { %v1518_v0 = vsel %vm189_vm0, %v1350_v63, %v1498_v16 }
 0x4fe   :  { %v1496_v15 = vpop.permute.xlu1 %1495 }
 0x4ff   :  { %v1517_v49 = vsel %vm189_vm0, %v1349_v12, %v1496_v15 }
 0x500   :  { %2215 = vmatprep.mubr.msk.f32.mxu1 %vm1523_vm4, %v1517_v49 }
 0x501   :  { %2216 = vmatmul.mubr.msk.f32.gmra.mxu1 %vm1523_vm4, %v1518_v0 }
 0x502   :  { %v1500_v32 = vpop.permute.xlu1 %1499  ;;  %v1504_v42 = vpop.permute.xlu0 %1503 }
 0x503   :  { %v1519_v10 = vsel %vm189_vm0, %v1351_v53, %v1500_v32  ;;  %v1521_v55 = vsel %vm189_vm0, %v1353_v28, %v1504_v42 }
 0x504   :  { %2218 = vmatprep.mubr.msk.f32.mxu1 %vm1523_vm4, %v1519_v10 }
 0x506   :  { %v1502_v20 = vpop.permute.xlu1 %1501 }
 0x507   :  { %v1520_v27 = vsel %vm189_vm0, %v1352_v58, %v1502_v20 }
 0x508   :  { %2219 = vmatmul.mubr.msk.f32.gmra.mxu1 %vm1523_vm4, %v1520_v27 }
 0x509   :  { %2221 = vmatprep.mubr.msk.f32.mxu1 %vm1523_vm4, %v1521_v55 }
 0x50a   :  { %v1506_v56 = vpop.permute.xlu1 %1505 }
 0x50b   :  { %v1522_v4 = vsel %vm189_vm0, %v1354_v30, %v1506_v56 }
 0x50c   :  { %2222 = vmatmul.mubr.msk.f32.gmra.mxu1 %vm1523_vm4, %v1522_v4 }
 0x517   :  { %v1767_v10 = vpop.permute.xlu1 %1766 }
 0x51c   :  { %v1803_v31 = vpop.permute.xlu1 %1802 }
 0x5ad   :  { %v2214_v48 = vpop.f32.mrf.mxu1 }
 0x5ae   :  { %v1654_v8 = vsel %vm189_vm0, %v2214_v48, 0.0 }
 0x5af   :  { %v1614_v43 = vpop.f32.mrf.mxu1 }
 0x5b0   :  { %v1653_v14 = vsel %vm189_vm0, %v1614_v43, 0.0 }
 0x5b1   :  { %v1655_v54 = vadd.f32 %v1654_v8, %v1653_v14 }
 0x5c1   :  { %v2217_v19 = vpop.f32.mrf.mxu1 }
 0x5c2   :  { %v1658_v37 = vsel %vm189_vm0, %v2217_v19, 0.0 }
 0x5c3   :  { %v1624_v60 = vpop.f32.mrf.mxu1 }
 0x5c4   :  { %v1656_v25 = vsel %vm189_vm0, %v1624_v60, 0.0 }
 0x5c5   :  { %v1657_v2 = vadd.f32 %v1656_v25, %v1655_v54 }
 0x5c7   :  { %v1659_v41 = vadd.f32 %v1658_v37, %v1657_v2 }
 0x5c8   :  { %v2220_v13 = vpop.f32.mrf.mxu1 }
 0x5c9   :  { %v1660_v35 = vrot.slane %v1659_v41, 4  ;;  %v1696_v6 = vsel %vm189_vm0, %v2220_v13, 0.0 }
 0x5ca   :  { %v1634_v44 = vpop.f32.mrf.mxu1 }
 0x5cb   :  { %v1661_v38 = vadd.f32 %v1660_v35, %v1659_v41  ;;  %v1695_v7 = vsel %vm189_vm0, %v1634_v44, 0.0  ;;  %v1755_v41 = vpop.permute.xlu1 %1754 }
 0x5cc   :  { %v2223_v61 = vpop.f32.mrf.mxu1  ;;  %v1697_v17 = vadd.f32 %v1696_v6, %v1695_v7 }
 0x5cd   :  { %v1662_v50 = vrot.slane %v1661_v38, 2  ;;  %v1700_v46 = vsel %vm189_vm0, %v2223_v61, 0.0 }
 0x5ce   :  { %v1644_v21 = vpop.f32.mrf.mxu1 }
 0x5cf   :  { %v1663_v36 = vadd.f32 %v1662_v50, %v1661_v38  ;;  %v1698_v24 = vsel %vm189_vm0, %v1644_v21, 0.0 }
 0x5d0   :  { %v1699_v39 = vadd.f32 %v1698_v24, %v1697_v17  ;;  %v1763_v24 = vpop.permute.xlu0 %1762 }
 0x5d1   :  { %v1664_v34 = vrot.slane %v1663_v36, 1 }
 0x5d2   :  { %v1701_v3 = vadd.f32 %v1700_v46, %v1699_v39 }
 0x5d3   :  { %v1665_v40 = vadd.f32 %v1664_v34, %v1663_v36 }
 0x5d4   :  { %v1702_v62 = vrot.slane %v1701_v3, 4 }
 0x5d5   :  { %v1666_v11 = vmul.f32 0.03125, %v1665_v40 }
 0x5d6   :  { %v1703_v5 = vadd.f32 %v1702_v62, %v1701_v3  ;;  %v1747_v62 = vpop.permute.xlu0 %1746 }
 0x5d7   :  { %v3312_v16 = vsub.f32 %v1614_v43, %v1666_v11  ;;  %v3314_v1 = vsub.f32 %v2214_v48, %v1666_v11  ;;  %v3316_v23 = vsub.f32 %v1624_v60, %v1666_v11  ;;  %v3318_v12 = vsub.f32 %v2217_v19, %v1666_v11 }
 0x5d8   :  { %v1704_v29 = vrot.slane %v1703_v5, 2 }
 0x5d9   :  { %v1671_v63 = vmul.f32 %v3312_v16, %v3312_v16  ;;  %v1672_v15 = vmul.f32 %v3314_v1, %v3314_v1  ;;  %v1673_v18 = vmul.f32 %v3316_v23, %v3316_v23  ;;  %v1674_v53 = vmul.f32 %v3318_v12, %v3318_v12 }
 0x5da   :  { %v1705_v49 = vadd.f32 %v1704_v29, %v1703_v5  ;;  %v1807_v5 = vpop.permute.xlu0 %1806 }
 0x5db   :  { %v1675_v45 = vsel %vm189_vm0, %v1671_v63, 0.0  ;;  %v1676_v0 = vsel %vm189_vm0, %v1672_v15, 0.0  ;;  %v1678_v26 = vsel %vm189_vm0, %v1673_v18, 0.0  ;;  %v1680_v58 = vsel %vm189_vm0, %v1674_v53, 0.0 }
 0x5dc   :  { %v1677_v59 = vadd.f32 %v1676_v0, %v1675_v45  ;;  %v1706_v22 = vrot.slane %v1705_v49, 1 }
 0x5de   :  { %v1679_v32 = vadd.f32 %v1678_v26, %v1677_v59  ;;  %v1707_v51 = vadd.f32 %v1706_v22, %v1705_v49  ;;  %v1795_v15 = vpop.permute.xlu0 %1794 }
 0x5e0   :  { %v1708_v33 = vmul.f32 0.03125, %v1707_v51  ;;  %v1681_v42 = vadd.f32 %v1680_v58, %v1679_v32 }
 0x5e2   :  { %v1709_v28 = vsub.f32 %v1634_v44, %v1708_v33  ;;  %v1710_v20 = vsub.f32 %v2220_v13, %v1708_v33  ;;  %v1711_v27 = vsub.f32 %v1644_v21, %v1708_v33  ;;  %v1712_v55 = vsub.f32 %v2223_v61, %v1708_v33  ;;  %v1759_v61 = vpop.permute.xlu1 %1758 }
 0x5e3   :  { %v1682_v30 = vrot.slane %v1681_v42, 4 }
 0x5e4   :  { %v1713_v56 = vmul.f32 %v1709_v28, %v1709_v28  ;;  %v1714_v4 = vmul.f32 %v1710_v20, %v1710_v20  ;;  %v1715_v47 = vmul.f32 %v1711_v27, %v1711_v27  ;;  %v1716_v19 = vmul.f32 %v1712_v55, %v1712_v55 }
 0x5e5   :  { %v1683_v48 = vadd.f32 %v1682_v30, %v1681_v42 }
 0x5e6   :  { %v1717_v43 = vsel %vm189_vm0, %v1713_v56, 0.0  ;;  %v1718_v14 = vsel %vm189_vm0, %v1714_v4, 0.0  ;;  %v1720_v60 = vsel %vm189_vm0, %v1715_v47, 0.0  ;;  %v1722_v37 = vsel %vm189_vm0, %v1716_v19, 0.0  ;;  %v1799_v36 = vpop.permute.xlu1 %1798  ;;  %v1791_v47 = vpop.permute.xlu0 %1790 }
 0x5e7   :  { %v1719_v8 = vadd.f32 %v1718_v14, %v1717_v43  ;;  %v1684_v54 = vrot.slane %v1683_v48, 2 }
 0x5e9   :  { %v1721_v25 = vadd.f32 %v1720_v60, %v1719_v8  ;;  %v1685_v2 = vadd.f32 %v1684_v54, %v1683_v48 }
 0x5ea   :  { %v1751_v40 = vpop.permute.xlu1 %1750  ;;  %v1779_v8 = vpop.permute.xlu0 %1778 }
 0x5eb   :  { %v1723_v13 = vadd.f32 %v1722_v37, %v1721_v25  ;;  %v1686_v35 = vrot.slane %v1685_v2, 1  ;;  %v2329_v25 = vld [vmem:[%s3397_s1 + $0x30] sm:$0xff]   ;;  %v2331_v37 = vld [vmem:[%s3397_s1 + $0x40] sm:$0xff]  }
 0x5ec   :  { %2248 = vmatprep.mubr.msk.bf16.mxu1 %vm1873_vm5, %v2331_v37  ;;  %v3468_v37 = vld [vmem:[#allocation5_spill] sm:$0xff] }
 0x5ed   :  { %v1724_v44 = vrot.slane %v1723_v13, 4  ;;  %v1687_v38 = vadd.f32 %v1686_v35, %v1685_v2  ;;  %v2330_v2 = vld [vmem:[%s3397_s1 + $0x38] sm:$0xff]  }
 0x5ee   :  { %v1787_v11 = vpop.permute.xlu1 %1786  ;;  %v1847_v35 = vpop.permute.xlu0 %1846 }
 0x5ef   :  { %v1725_v7 = vadd.f32 %v1724_v44, %v1723_v13  ;;  %v1688_v6 = vmul.f32 0.03125, %v1687_v38  ;;  %v2355_v13 = vld [vmem:[%s3398_s2 + $0x18] sm:$0xff] }
 0x5f1   :  { %v1726_v50 = vrot.slane %v1725_v7, 2  ;;  %v1689_v39 = vadd.f32 1e-05, %v1688_v6 }
 0x5f2   :  { %v1739_v63 = vpop.permute.xlu1 %1738 }
 0x5f3   :  { %v1727_v17 = vadd.f32 %v1726_v50, %v1725_v7  ;;  %2341 = vrsqrt.f32 %v1689_v39  ;;  %v1843_v7 = vpop.permute.xlu0 %1842 }
 0x5f5   :  { %v1728_v21 = vrot.slane %v1727_v17, 1 }
 0x5f6   :  { %v1743_v56 = vpop.permute.xlu1 %1742 }
 0x5f7   :  { %v1729_v34 = vadd.f32 %v1728_v21, %v1727_v17  ;;  %v1835_v21 = vpop.permute.xlu0 %1834 }
 0x5f9   :  { %v1730_v46 = vmul.f32 0.03125, %v1729_v34 }
 0x5fa   :  { %v1783_v19 = vpop.permute.xlu1 %1782 }
 0x5fb   :  { %v1731_v3 = vadd.f32 1e-05, %v1730_v46  ;;  %v1827_v46 = vpop.permute.xlu0 %1826 }
 0x5fd   :  { %2343 = vrsqrt.f32 %v1731_v3 }
 0x5fe   :  { %v1851_v44 = vpop.permute.xlu1 %1850 }
 0x600   :  { %v2342_v29 = vpop.eup %2341 }
 0x601   :  { %v1694_v49 = vmul.f32 %v2342_v29, %v3318_v12  ;;  %v1693_v45 = vmul.f32 %v2342_v29, %v3316_v23  ;;  %v1691_v30 = vmul.f32 %v2342_v29, %v3312_v16  ;;  %v1692_v4 = vmul.f32 %v2342_v29, %v3314_v1 }
 0x602   :  { %v1839_v50 = vpop.permute.xlu1 %1838 }
 0x603   :  { %v1772_v33 = vmul.f32 %v1751_v40, %v1694_v49  ;;  %v1771_v42 = vmul.f32 %v1747_v62, %v1693_v45 }
 0x605   :  { %v1812_v14 = vadd.f32 %v1791_v47, %v1772_v33 }
 0x60a   :  { %v2344_v18 = vpop.eup %2343 }
 0x60b   :  { %v1736_v0 = vmul.f32 %v2344_v18, %v1712_v55  ;;  %v1733_v53 = vmul.f32 %v2344_v18, %v1709_v28  ;;  %v1734_v59 = vmul.f32 %v2344_v18, %v1710_v20  ;;  %v1735_v22 = vmul.f32 %v2344_v18, %v1711_v27 }
 0x60c   :  { %v1769_v28 = vmul.f32 %v1739_v63, %v1691_v30  ;;  %v1811_v20 = vadd.f32 %v1787_v11, %v1771_v42 }
 0x60d   :  { %v1776_v26 = vmul.f32 %v1767_v10, %v1736_v0  ;;  %v1773_v32 = vmul.f32 %v1755_v41, %v1733_v53  ;;  %v1774_v51 = vmul.f32 %v1759_v61, %v1734_v59  ;;  %v1775_v58 = vmul.f32 %v1763_v24, %v1735_v22  ;;  %v1831_v24 = vpop.permute.xlu1 %1830 }
 0x60e   :  { %v1770_v10 = vmul.f32 %v1743_v56, %v1692_v4  ;;  %v1818_v16 = vpack.c.bf16 %v1812_v14, %v1811_v20  ;;  %v1809_v60 = vadd.f32 %v1779_v8, %v1769_v28  ;;  %v2373_v41 = vmov 14   ;;  %v3467_v8 = vld [vmem:[#allocation6_spill] sm:$0xff] }
 0x60f   :  { %v1814_v48 = vadd.f32 %v1799_v36, %v1774_v51  ;;  %v1815_v12 = vadd.f32 %v1803_v31, %v1775_v58  ;;  %v1816_v43 = vadd.f32 %v1807_v5, %v1776_v26  ;;  %v1813_v23 = vadd.f32 %v1795_v15, %v1773_v32  ;;  %v2328_v31 = vld [vmem:[%s3397_s1 + $0x28] sm:$0xff]   ;;  %2321 = vset.pattern.permute.xlu1 %v2373_v41 }
 0x610   :  { %v1810_v54 = vadd.f32 %v1783_v19, %v1770_v10  ;;  %2322 = vset.pattern.permute.xlu0 %v2373_v41  ;;  %1980 = vperm.xlu1 %2321, %v3300_v9   ;;  %v3466_v19 = vld [vmem:[#allocation4_spill] sm:$0xff]  ;;  %v3469_v41 = vld [vmem:[#allocation7_spill] sm:$0xff] }
 0x611   :  { %v1820_v55 = vpack.c.bf16 %v1816_v43, %v1815_v12  ;;  %v1819_v27 = vpack.c.bf16 %v1814_v48, %v1813_v23  ;;  %1984 = vperm.xlu0 %2322, %v3238_v57   ;;  %v1823_v15 = vpop.permute.xlu1 %1822  ;;  %v2332_v43 = vld [vmem:[%s3397_s1 + $0x48] sm:$0xff]  }
 0x612   :  { %v1817_v1 = vpack.c.bf16 %v1810_v54, %v1809_v60  ;;  %v2356_v54 = vld [vmem:[%s3398_s2 + $0x59] ss:$0 sm:$0xff] }
 0x613   :  { %2224 = vmatprep.subr.bf16.mxu0 %v1820_v55 }
 0x614   :  { %2225 = vmatpush3.bf16.msra.mxu0 %v1820_v55  ;;  %1988 = vperm.xlu1 %2321, %v3293_v52  }
 0x615   :  { %2226 = vmatprep.subr.bf16.mxu0 %v1819_v27 }
 0x618   :  { %2227 = vmatpush3.bf16.msra.mxu0 %v1819_v27  ;;  %1992 = vperm.xlu1 %2321, %v2355_v13   ;;  %v2142_v27 = vld [vmem:[%s3398_s2 + $0x5a] ss:$0 sm:$0xff]  ;;  %v217_v13 = vmul.f32 %v3469_v41, %v3468_v37 }
 0x619   :  { %2228 = vmatprep.subr.bf16.mxu0 %v1818_v16 }
 0x61c   :  { %2229 = vmatpush3.bf16.msra.mxu0 %v1818_v16  ;;  %v246_v16 = vmul.f32 %v3467_v8, %v3466_v19 }
 0x61d   :  { %2230 = vmatprep.subr.bf16.mxu0 %v1817_v1 }
 0x620   :  { %2231 = vmatpush3.bf16.msra.mxu0 %v1817_v1 }
 0x623   :  { %2233 = vmatmul.mubr.msk.bf16.vlgmr.msra.gmra.mxu0 %vm1873_vm5, %v2328_v31 }
 0x624   :  { %2236 = vmatprep.mubr.msk.bf16.mxu0 %vm1873_vm5, %v2329_v25 }
 0x62b   :  { %2237 = vmatmul.mubr.msk.bf16.gmra.mxu0 %vm1873_vm5, %v2330_v2 }
 0x68b   :  { %v1981_v23 = vpop.permute.xlu1 %1980 }
 0x68c   :  { %v1985_v25 = vpop.permute.xlu0 %1984 }
 0x68f   :  { %v1989_v55 = vpop.permute.xlu1 %1988 }
 0x693   :  { %v1993_v14 = vpop.permute.xlu1 %1992 }
 0x6e3   :  { %v2234_v38 = vpop.f32.mrf.mxu0 }
 0x6e4   :  { %v1929_v62 = vadd.f32 %v2234_v38, %v1831_v24 }
 0x6e5   :  { %v1920_v61 = vpop.f32.mrf.mxu0 }
 0x6e6   :  { %v1961_v22 = vmul.f32 0.01, %v1929_v62  ;;  %v1921_v26 = vadd.f32 %v1920_v61, %v1823_v15  ;;  %vm1953_vm11 = vcmp.ge.f32.partialorder %v1929_v62, 0.0 }
 0x6e7   :  { %v2235_v6 = vpop.f32.mrf.mxu0 }
 0x6e8   :  { %v1932_v52 = vadd.f32 %v2235_v6, %v1835_v21  ;;  %v1959_v30 = vmul.f32 0.01, %v1921_v26  ;;  %v1969_v56 = vsel %vm1953_vm11, %v1929_v62, %v1961_v22  ;;  %vm1951_vm13 = vcmp.ge.f32.partialorder %v1921_v26, 0.0 }
 0x6e9   :  { %v1923_v17 = vpop.f32.mrf.mxu0 }
 0x6ea   :  { %v1962_v18 = vmul.f32 0.01, %v1932_v52  ;;  %v1924_v49 = vadd.f32 %v1923_v17, %v1827_v46  ;;  %vm1954_vm10 = vcmp.ge.f32.partialorder %v1932_v52, 0.0  ;;  %v1967_v48 = vsel %vm1951_vm13, %v1921_v26, %v1959_v30  ;;  %v3470_v17 = vld [vmem:[#allocation2_spill] sm:$0xff] }
 0x6eb   :  { %v2238_v36 = vpop.f32.mrf.mxu0 }
 0x6ec   :  { %v1945_v9 = vadd.f32 %v2238_v36, %v1847_v35  ;;  %v1960_v33 = vmul.f32 0.01, %v1924_v49  ;;  %v1970_v42 = vsel %vm1954_vm10, %v1932_v52, %v1962_v18  ;;  %vm1952_vm12 = vcmp.ge.f32.partialorder %v1924_v49, 0.0 }
 0x6ed   :  { %v1936_v57 = vpop.f32.mrf.mxu0  ;;  %v1976_v4 = vpack.c.bf16 %v1970_v42, %v1969_v56 }
 0x6ee   :  { %v1937_v39 = vadd.f32 %v1936_v57, %v1839_v50  ;;  %v1965_v3 = vmul.f32 0.01, %v1945_v9  ;;  %vm1957_vm6 = vcmp.ge.f32.partialorder %v1945_v9, 0.0  ;;  %v1968_v47 = vsel %vm1952_vm12, %v1924_v49, %v1960_v33  ;;  %v3471_v57 = vld [vmem:[#allocation3_spill] sm:$0xff] }
 0x6ef   :  { %v2239_v34 = vpop.f32.mrf.mxu0  ;;  %v1975_v12 = vpack.c.bf16 %v1968_v47, %v1967_v48 }
 0x6f0   :  { %v1948_v40 = vadd.f32 %v2239_v34, %v1851_v44  ;;  %v1963_v5 = vmul.f32 0.01, %v1937_v39  ;;  %vm1955_vm8 = vcmp.ge.f32.partialorder %v1937_v39, 0.0  ;;  %v1973_v0 = vsel %vm1957_vm6, %v1945_v9, %v1965_v3 }
 0x6f1   :  { %v1939_v11 = vpop.f32.mrf.mxu0 }
 0x6f2   :  { %vm1958_vm7 = vcmp.ge.f32.partialorder %v1948_v40, 0.0  ;;  %v1966_v29 = vmul.f32 0.01, %v1948_v40  ;;  %v1940_v63 = vadd.f32 %v1939_v11, %v1843_v7  ;;  %v1971_v32 = vsel %vm1955_vm8, %v1937_v39, %v1963_v5 }
 0x6f4   :  { %vm1956_vm9 = vcmp.ge.f32.partialorder %v1940_v63, 0.0  ;;  %v1964_v45 = vmul.f32 0.01, %v1940_v63  ;;  %v1974_v53 = vsel %vm1958_vm7, %v1948_v40, %v1966_v29 }
 0x6f5   :  { %v1978_v59 = vpack.c.bf16 %v1974_v53, %v1973_v0 }
 0x6f6   :  { %v1972_v51 = vsel %vm1956_vm9, %v1940_v63, %v1964_v45 }
 0x6f7   :  { %2240 = vmatprep.subr.bf16.mxu1 %v1978_v59  ;;  %v1977_v58 = vpack.c.bf16 %v1972_v51, %v1971_v32 }
 0x6f8   :  { %2241 = vmatpush3.bf16.msra.mxu1 %v1978_v59 }
 0x6f9   :  { %2242 = vmatprep.subr.bf16.mxu1 %v1977_v58 }
 0x6fc   :  { %2243 = vmatpush3.bf16.msra.mxu1 %v1977_v58 }
 0x6fd   :  { %2244 = vmatprep.subr.bf16.mxu1 %v1976_v4 }
 0x700   :  { %2245 = vmatpush3.bf16.msra.mxu1 %v1976_v4 }
 0x701   :  { %2246 = vmatprep.subr.bf16.mxu1 %v1975_v12 }
 0x704   :  { %2247 = vmatpush3.bf16.msra.mxu1 %v1975_v12 }
 0x707   :  { %2249 = vmatmul.mubr.msk.bf16.vlgmr.msra.gmra.mxu1 %vm1873_vm5, %v2332_v43 }
 0x7c7   :  { %v2250_v28 = vpop.f32.mrf.mxu1 }
 0x7c8   :  { %v2054_v20 = vadd.f32 %v2250_v28, %v1989_v55 }
 0x7c9   :  { %v2045_v10 = vpop.f32.mrf.mxu1 }
 0x7ca   :  { %v2062_v60 = vsub.f32 %v2054_v20, %v2356_v54  ;;  %v2046_v1 = vadd.f32 %v2045_v10, %v1981_v23 }
 0x7cb   :  { %v2251_v31 = vpop.f32.mrf.mxu1 }
 0x7cc   :  { %v2070_v2 = vmul.f32 %v2142_v27, %v2062_v60  ;;  %v2060_v35 = vsub.f32 %v2046_v1, %v2356_v54  ;;  %v2057_v44 = vadd.f32 %v2251_v31, %v1993_v14 }
 0x7cd   :  { %v2048_v38 = vpop.f32.mrf.mxu1 }
 0x7ce   :  { %v2078_v7 = vmul.f32 %v2070_v2, %v246_v16  ;;  %v2068_v61 = vmul.f32 %v2142_v27, %v2060_v35  ;;  %v2063_v50 = vsub.f32 %v2057_v44, %v2356_v54  ;;  %v2049_v6 = vadd.f32 %v2048_v38, %v1985_v25 }
 0x7d0   :  { %v2080_v21 = vadd.f32 %v2078_v7, %v3470_v17  ;;  %v2072_v36 = vmul.f32 %v2068_v61, %v217_v13  ;;  %v2071_v9 = vmul.f32 %v2142_v27, %v2063_v50  ;;  %v2061_v24 = vsub.f32 %v2049_v6, %v2356_v54 }
 0x7d2   :  { %2082 = vst.msk [vmem:[%s3399_s3 + $0x10] sm:$0xff] %vm189_vm0, %v2080_v21  ;;  %v2074_v39 = vadd.f32 %v2072_v36, %v3471_v57  ;;  %v2079_v52 = vmul.f32 %v2071_v9, %v246_v16  ;;  %v2069_v34 = vmul.f32 %v2142_v27, %v2061_v24 }
 0x7d4   :  { %2076 = vst.msk [vmem:[%s3399_s3] sm:$0xff] %vm189_vm0, %v2074_v39  ;;  %v2081_v46 = vadd.f32 %v2079_v52, %v3470_v17  ;;  %v2073_v3 = vmul.f32 %v2069_v34, %v217_v13 }
 0x7d6   :  { %2083 = vst.msk [vmem:[%s3399_s3 + $0x18] sm:$0xff] %vm189_vm0, %v2081_v46  ;;  %v2075_v40 = vadd.f32 %v2073_v3, %v3471_v57 }
 0x7d8   :  { %2077 = vst.msk [vmem:[%s3399_s3 + $0x8] sm:$0xff] %vm189_vm0, %v2075_v40 }

</bundles_post_ra>
